<compile_context>
chip_gen: v7x
topology: tpu7x:2x2x1
jax: 0.10.0
libtpu: 0.0.40
codegen_flags: <defaults>
</compile_context>

<pallas_src>
import functools
import math

import jax
import jax.numpy as jnp
from jax.experimental import pallas as pl
from jax.experimental.pallas import tpu as pltpu

# ---------------- tiny BERT config (synthetic) ----------------
VOCAB = 100
TYPE_VOCAB = 2
MAX_POS = 16
HIDDEN = 32
N_HEADS = 4
HEAD_DIM = HIDDEN // N_HEADS
N_LAYERS = 2
INTER = 64
B = 2
S = 8
LN_EPS = 1e-12
_ATTN_SCALE = 1.0 / math.sqrt(HEAD_DIM)


# ---------------- in-kernel helpers ----------------
def _layernorm(h, g, b):
    mean = jnp.mean(h, axis=-1, keepdims=True)
    cent = h - mean
    var = jnp.mean(cent * cent, axis=-1, keepdims=True)
    return cent * jax.lax.rsqrt(var + LN_EPS) * g + b


def _mm(x, w_bf16):
    # Activations cast to bf16 at the MXU boundary; weights arrive pre-cast bf16.
    return jnp.dot(x.astype(jnp.bfloat16), w_bf16, preferred_element_type=jnp.float32)


def _gelu_tanh(y):
    # Tanh-approximate GELU (HF 'gelu_new'); exact erf-GELU would differ slightly from HF default.
    return 0.5 * y * (1.0 + jnp.tanh(0.7978845608028654 * (y + 0.044715 * y * y * y)))


# ---------------- fused encoder kernel ----------------
def _bert_kernel(emb_ref, maskb_ref,
                 emb_ln_g_ref, emb_ln_b_ref,
                 qkv_w_ref, qkv_b_ref,
                 ao_w_ref, ao_b_ref,
                 attn_ln_g_ref, attn_ln_b_ref,
                 inter_w_ref, inter_b_ref,
                 out_w_ref, out_b_ref,
                 out_ln_g_ref, out_ln_b_ref,
                 pooler_w_ref, pooler_b_ref,
                 pooled_ref):
    # Embeddings already summed in the wrapper; apply embedding LayerNorm here.
    h = _layernorm(emb_ref[...], emb_ln_g_ref[...], emb_ln_b_ref[...])      # (B*S, H) f32
    mask_nb = maskb_ref[...]                                                # (N_HEADS*B, 1, S)

    for lyr in range(N_LAYERS):
        x = h

        # Fused Q/K/V projection: one MXU pass -> (B*S, 3H) f32.
        qkv = _mm(x, qkv_w_ref[lyr]) + qkv_b_ref[lyr]
        qkv3 = qkv.reshape(B, S, 3 * HIDDEN)                                # sublane-tile split only

        # Head-batched Q/K/V: (N_HEADS*B, S, HEAD_DIM), head-major / batch-minor on axis 0.
        def gather_heads(base):
            return jnp.concatenate(
                [qkv3[:, :, base + n * HEAD_DIM: base + (n + 1) * HEAD_DIM]
                 for n in range(N_HEADS)],
                axis=0)

        qh = gather_heads(0)
        kh = gather_heads(HIDDEN)
        vh = gather_heads(2 * HIDDEN)

        # Attention over all (head, batch) slices with two batched MXU contractions.
        scores = jnp.einsum('bqd,bkd->bqk',
                            qh.astype(jnp.bfloat16), kh.astype(jnp.bfloat16),
                            preferred_element_type=jnp.float32) * _ATTN_SCALE
        scores = scores + mask_nb                                           # (N*B, S, S) f32
        m = jnp.max(scores, axis=-1, keepdims=True)
        p = jnp.exp(scores - m)
        p = p * pl.reciprocal(jnp.sum(p, axis=-1, keepdims=True), approx=True)

        ctx = jnp.einsum('bqk,bkd->bqd',
                         p.astype(jnp.bfloat16), vh.astype(jnp.bfloat16),
                         preferred_element_type=jnp.float32)                # (N*B, S, D) f32

        # Attention output projection: one batched contraction over heads, then a cheap
        # leading-axis sum (no per-head matmul loop, no lane-dim concatenate).
        ctx3 = ctx.reshape(N_HEADS, B * S, HEAD_DIM)                        # order-preserving
        partial = jnp.einsum('ntd,ndh->nth',
                             ctx3.astype(jnp.bfloat16), ao_w_ref[lyr],
                             preferred_element_type=jnp.float32)            # (N, B*S, H)
        attn_out = jnp.sum(partial, axis=0) + ao_b_ref[lyr]                 # (B*S, H)

        h = _layernorm(attn_out + x, attn_ln_g_ref[lyr], attn_ln_b_ref[lyr])

        inter = _gelu_tanh(_mm(h, inter_w_ref[lyr]) + inter_b_ref[lyr])     # (B*S, INTER)
        ffn = _mm(inter, out_w_ref[lyr]) + out_b_ref[lyr]                   # (B*S, H)
        h = _layernorm(ffn + h, out_ln_g_ref[lyr], out_ln_b_ref[lyr])

    # Pooler: tanh(W @ h[CLS] + b)  == outputs[1] of the PyTorch BERT model.
    cls = h.reshape(B, S, HIDDEN)[:, 0, :]                                  # (B, H)
    pooled = jnp.tanh(_mm(cls, pooler_w_ref[...]) + pooler_b_ref[...])
    pooled_ref[...] = pooled.astype(pooled_ref.dtype)


def _zero_block_index(nd, i):
    return (0,) * nd


# ---------------- forward (BertEncoder wrapper semantics) ----------------
def bert_encoder_forward(params, input_ids, attention_mask, token_type_ids=None):
    Bsz, Seq = input_ids.shape
    if token_type_ids is None:
        token_type_ids = jnp.zeros_like(input_ids)

    # Embedding gathers stay in plain JAX glue.
    emb = (
        params["word_emb"][input_ids]
        + params["pos_emb"][jnp.arange(Seq)][None, :, :]
        + params["type_emb"][token_type_ids]
    )
    emb = emb.reshape(Bsz * Seq, HIDDEN).astype(jnp.float32)

    # Additive attention bias (0 = keep, -1e9 = masked), replicated per head so it lines up
    # with the (N_HEADS*B, S, S) head-batched scores (head-major, batch-minor on axis 0).
    neg = (1.0 - attention_mask.astype(jnp.float32)) * -1e9                 # (B, S)
    mask_nb = jnp.tile(neg[:, None, :], (N_HEADS, 1, 1))                    # (N*B, 1, S)

    # Pre-cast weights to bf16 (MXU-native) once, outside the kernel; biases / LN stay f32.
    bf16 = jnp.bfloat16
    qkv_w = params["qkv_w"].astype(bf16)                                     # (L, H, 3H)
    ao_w = params["ao_w"].reshape(N_LAYERS, N_HEADS, HEAD_DIM, HIDDEN).astype(bf16)
    inter_w = params["inter_w"].astype(bf16)                                 # (L, H, I)
    out_w = params["out_w"].astype(bf16)                                     # (L, I, H)
    pooler_w = params["pooler_w"].astype(bf16)                               # (H, H)

    args = (
        emb, mask_nb,
        params["emb_ln_g"], params["emb_ln_b"],
        qkv_w, params["qkv_b"],
        ao_w, params["ao_b"],
        params["attn_ln_g"], params["attn_ln_b"],
        inter_w, params["inter_b"],
        out_w, params["out_b"],
        params["out_ln_g"], params["out_ln_b"],
        pooler_w, params["pooler_b"],
    )

    in_specs = [
        pl.BlockSpec(a.shape, functools.partial(_zero_block_index, a.ndim)) for a in args
    ]

    return pl.pallas_call(
        _bert_kernel,
        out_shape=jax.ShapeDtypeStruct((Bsz, HIDDEN), jnp.float32),
        grid=(1,),
        in_specs=in_specs,
        out_specs=pl.BlockSpec((Bsz, HIDDEN), lambda i: (0, 0)),
        compiler_params=pltpu.CompilerParams(
            dimension_semantics=("arbitrary",),
        ),
    )(*args)


# ---------------- parameter init (deterministic, synthetic; fused/stacked layout) ----------------
def init_params(key):
    keys = iter(jax.random.split(key, 64))

    def nrm(shape, scale=0.02):
        return scale * jax.random.normal(next(keys), shape, dtype=jnp.float32)

    def layer_stack(make):
        return jnp.stack([make() for _ in range(N_LAYERS)], axis=0)

    params = {
        "word_emb": nrm((VOCAB, HIDDEN)),
        "pos_emb": nrm((MAX_POS, HIDDEN)),
        "type_emb": nrm((TYPE_VOCAB, HIDDEN)),
        "emb_ln_g": jnp.ones((1, HIDDEN), jnp.float32),
        "emb_ln_b": jnp.zeros((1, HIDDEN), jnp.float32),
        # fused QKV: columns [0:H)=Q, [H:2H)=K, [2H:3H)=V, head-major within each block.
        "qkv_w": layer_stack(lambda: jnp.concatenate(
            [nrm((HIDDEN, HIDDEN)), nrm((HIDDEN, HIDDEN)), nrm((HIDDEN, HIDDEN))], axis=1)),
        "qkv_b": jnp.zeros((N_LAYERS, 1, 3 * HIDDEN), jnp.float32),
        "ao_w": layer_stack(lambda: nrm((HIDDEN, HIDDEN))),
        "ao_b": jnp.zeros((N_LAYERS, 1, HIDDEN), jnp.float32),
        "attn_ln_g": jnp.ones((N_LAYERS, 1, HIDDEN), jnp.float32),
        "attn_ln_b": jnp.zeros((N_LAYERS, 1, HIDDEN), jnp.float32),
        "inter_w": layer_stack(lambda: nrm((HIDDEN, INTER))),
        "inter_b": jnp.zeros((N_LAYERS, 1, INTER), jnp.float32),
        "out_w": layer_stack(lambda: nrm((INTER, HIDDEN))),
        "out_b": jnp.zeros((N_LAYERS, 1, HIDDEN), jnp.float32),
        "out_ln_g": jnp.ones((N_LAYERS, 1, HIDDEN), jnp.float32),
        "out_ln_b": jnp.zeros((N_LAYERS, 1, HIDDEN), jnp.float32),
        "pooler_w": nrm((HIDDEN, HIDDEN)),
        "pooler_b": jnp.zeros((1, HIDDEN), jnp.float32),
    }
    return params


if __name__ == "__main__":
    key = jax.random.PRNGKey(0)
    k_params, k_ids = jax.random.split(key)
    params = init_params(k_params)

    input_ids = jax.random.randint(k_ids, (B, S), 0, VOCAB, dtype=jnp.int32)
    attention_mask = jnp.ones((B, S), dtype=jnp.int32).at[1, 6:].set(0)  # pad last 2 tokens of ex 1
    token_type_ids = jnp.zeros((B, S), dtype=jnp.int32)

    fwd = jax.jit(bert_encoder_forward)
    pooled = fwd(params, input_ids, attention_mask, token_type_ids)
    pooled = jax.block_until_ready(pooled)
    assert pooled.shape == (B, HIDDEN)
    assert bool(jnp.all(jnp.isfinite(pooled)))
    print("KERNEL_OK")
</pallas_src>

<mosaic_0001>
module attributes {stable_mosaic.version = 11 : i64} {
  func.func @_bert_kernel(%arg0: i32, %arg1: memref<16x32xf32, #tpu.memory_space<vmem>>, %arg2: memref<8x1x8xf32, #tpu.memory_space<vmem>>, %arg3: memref<1x32xf32, #tpu.memory_space<vmem>>, %arg4: memref<1x32xf32, #tpu.memory_space<vmem>>, %arg5: memref<2x32x96xbf16, #tpu.memory_space<vmem>>, %arg6: memref<2x1x96xf32, #tpu.memory_space<vmem>>, %arg7: memref<2x4x8x32xbf16, #tpu.memory_space<vmem>>, %arg8: memref<2x1x32xf32, #tpu.memory_space<vmem>>, %arg9: memref<2x1x32xf32, #tpu.memory_space<vmem>>, %arg10: memref<2x1x32xf32, #tpu.memory_space<vmem>>, %arg11: memref<2x32x64xbf16, #tpu.memory_space<vmem>>, %arg12: memref<2x1x64xf32, #tpu.memory_space<vmem>>, %arg13: memref<2x64x32xbf16, #tpu.memory_space<vmem>>, %arg14: memref<2x1x32xf32, #tpu.memory_space<vmem>>, %arg15: memref<2x1x32xf32, #tpu.memory_space<vmem>>, %arg16: memref<2x1x32xf32, #tpu.memory_space<vmem>>, %arg17: memref<32x32xbf16, #tpu.memory_space<vmem>>, %arg18: memref<1x32xf32, #tpu.memory_space<vmem>>, %arg19: memref<2x32xf32, #tpu.memory_space<vmem>>) attributes {dimension_semantics = [#tpu.dimension_semantics<arbitrary>], iteration_bounds = array<i64: 1>, scalar_prefetch = 0 : i64, scratch_operands = 0 : i64, tpu.core_type = #tpu.core_type<tc>, window_params = [{pipeline_mode = #tpu.pipeline_mode<synchronous>, transform_indices = @transform_0, window_bounds = array<i64: 16, 32>}, {pipeline_mode = #tpu.pipeline_mode<synchronous>, transform_indices = @transform_1, window_bounds = array<i64: 8, 1, 8>}, {pipeline_mode = #tpu.pipeline_mode<synchronous>, transform_indices = @transform_2, window_bounds = array<i64: 1, 32>}, {pipeline_mode = #tpu.pipeline_mode<synchronous>, transform_indices = @transform_3, window_bounds = array<i64: 1, 32>}, {pipeline_mode = #tpu.pipeline_mode<synchronous>, transform_indices = @transform_4, window_bounds = array<i64: 2, 32, 96>}, {pipeline_mode = #tpu.pipeline_mode<synchronous>, transform_indices = @transform_5, window_bounds = array<i64: 2, 1, 96>}, {pipeline_mode = #tpu.pipeline_mode<synchronous>, transform_indices = @transform_6, window_bounds = array<i64: 2, 4, 8, 32>}, {pipeline_mode = #tpu.pipeline_mode<synchronous>, transform_indices = @transform_7, window_bounds = array<i64: 2, 1, 32>}, {pipeline_mode = #tpu.pipeline_mode<synchronous>, transform_indices = @transform_8, window_bounds = array<i64: 2, 1, 32>}, {pipeline_mode = #tpu.pipeline_mode<synchronous>, transform_indices = @transform_9, window_bounds = array<i64: 2, 1, 32>}, {pipeline_mode = #tpu.pipeline_mode<synchronous>, transform_indices = @transform_10, window_bounds = array<i64: 2, 32, 64>}, {pipeline_mode = #tpu.pipeline_mode<synchronous>, transform_indices = @transform_11, window_bounds = array<i64: 2, 1, 64>}, {pipeline_mode = #tpu.pipeline_mode<synchronous>, transform_indices = @transform_12, window_bounds = array<i64: 2, 64, 32>}, {pipeline_mode = #tpu.pipeline_mode<synchronous>, transform_indices = @transform_13, window_bounds = array<i64: 2, 1, 32>}, {pipeline_mode = #tpu.pipeline_mode<synchronous>, transform_indices = @transform_14, window_bounds = array<i64: 2, 1, 32>}, {pipeline_mode = #tpu.pipeline_mode<synchronous>, transform_indices = @transform_15, window_bounds = array<i64: 2, 1, 32>}, {pipeline_mode = #tpu.pipeline_mode<synchronous>, transform_indices = @transform_16, window_bounds = array<i64: 32, 32>}, {pipeline_mode = #tpu.pipeline_mode<synchronous>, transform_indices = @transform_17, window_bounds = array<i64: 1, 32>}, {pipeline_mode = #tpu.pipeline_mode<synchronous>, transform_indices = @transform_18, window_bounds = array<i64: 2, 32>}]} {
    %c0 = arith.constant 0 : index
    %c0_0 = arith.constant 0 : index
    %0 = vector.load %arg1[%c0, %c0_0] : memref<16x32xf32, #tpu.memory_space<vmem>>, vector<16x32xf32>
    %c0_1 = arith.constant 0 : index
    %c0_2 = arith.constant 0 : index
    %1 = vector.load %arg3[%c0_1, %c0_2] : memref<1x32xf32, #tpu.memory_space<vmem>>, vector<1x32xf32>
    %c0_3 = arith.constant 0 : index
    %c0_4 = arith.constant 0 : index
    %2 = vector.load %arg4[%c0_3, %c0_4] : memref<1x32xf32, #tpu.memory_space<vmem>>, vector<1x32xf32>
    %cst = arith.constant dense<0.000000e+00> : vector<16xf32>
    %3 = vector.multi_reduction <add>, %0, %cst [1] : vector<16x32xf32> to vector<16xf32>
    %4 = vector.shape_cast %3 : vector<16xf32> to vector<16x1xf32>
    %cst_5 = arith.constant 3.200000e+01 : f32
    %5 = vector.broadcast %cst_5 : f32 to vector<16x1xf32>
    %6 = arith.divf %4, %5 : vector<16x1xf32>
    %7 = vector.broadcast %6 : vector<16x1xf32> to vector<16x32xf32>
    %8 = arith.subf %0, %7 : vector<16x32xf32>
    %9 = arith.mulf %8, %8 : vector<16x32xf32>
    %cst_6 = arith.constant dense<0.000000e+00> : vector<16xf32>
    %10 = vector.multi_reduction <add>, %9, %cst_6 [1] : vector<16x32xf32> to vector<16xf32>
    %11 = vector.shape_cast %10 : vector<16xf32> to vector<16x1xf32>
    %cst_7 = arith.constant 3.200000e+01 : f32
    %12 = vector.broadcast %cst_7 : f32 to vector<16x1xf32>
    %13 = arith.divf %11, %12 : vector<16x1xf32>
    %cst_8 = arith.constant 9.99999996E-13 : f32
    %14 = vector.broadcast %cst_8 : f32 to vector<16x1xf32>
    %15 = arith.addf %13, %14 : vector<16x1xf32>
    %16 = math.rsqrt %15 : vector<16x1xf32>
    %17 = vector.broadcast %16 : vector<16x1xf32> to vector<16x32xf32>
    %18 = arith.mulf %8, %17 : vector<16x32xf32>
    %19 = vector.broadcast %1 : vector<1x32xf32> to vector<16x32xf32>
    %20 = arith.mulf %18, %19 : vector<16x32xf32>
    %21 = vector.broadcast %2 : vector<1x32xf32> to vector<16x32xf32>
    %22 = arith.addf %20, %21 : vector<16x32xf32>
    %c0_9 = arith.constant 0 : index
    %c0_10 = arith.constant 0 : index
    %c0_11 = arith.constant 0 : index
    %23 = vector.load %arg2[%c0_9, %c0_10, %c0_11] : memref<8x1x8xf32, #tpu.memory_space<vmem>>, vector<8x1x8xf32>
    %c0_12 = arith.constant 0 : index
    %c0_13 = arith.constant 0 : index
    %c0_14 = arith.constant 0 : index
    %24 = vector.load %arg5[%c0_12, %c0_13, %c0_14] : memref<2x32x96xbf16, #tpu.memory_space<vmem>>, vector<1x32x96xbf16>
    %25 = vector.shape_cast %24 : vector<1x32x96xbf16> to vector<32x96xbf16>
    %26 = arith.truncf %22 : vector<16x32xf32> to vector<16x32xbf16>
    %cst_15 = arith.constant dense<0.000000e+00> : vector<16x96xf32>
    %27 = tpu.matmul %26, %25, %cst_15 {dimension_numbers = #tpu.dot_dimension_numbers<[1], [0], [0], [1], [0, 0, 1, 1], [], []>} : vector<16x32xbf16>, vector<32x96xbf16>, vector<16x96xf32> -> vector<16x96xf32>
    %c0_16 = arith.constant 0 : index
    %c0_17 = arith.constant 0 : index
    %c0_18 = arith.constant 0 : index
    %28 = vector.load %arg6[%c0_16, %c0_17, %c0_18] : memref<2x1x96xf32, #tpu.memory_space<vmem>>, vector<1x1x96xf32>
    %29 = vector.shape_cast %28 : vector<1x1x96xf32> to vector<1x96xf32>
    %30 = vector.broadcast %29 : vector<1x96xf32> to vector<16x96xf32>
    %31 = arith.addf %27, %30 : vector<16x96xf32>
    %32 = vector.shape_cast %31 : vector<16x96xf32> to vector<2x8x96xf32>
    %33 = vector.extract_strided_slice %32 {offsets = [0, 0, 0], sizes = [2, 8, 8], strides = [1, 1, 1]} : vector<2x8x96xf32> to vector<2x8x8xf32>
    %34 = vector.extract_strided_slice %32 {offsets = [0, 0, 8], sizes = [2, 8, 8], strides = [1, 1, 1]} : vector<2x8x96xf32> to vector<2x8x8xf32>
    %35 = vector.extract_strided_slice %32 {offsets = [0, 0, 16], sizes = [2, 8, 8], strides = [1, 1, 1]} : vector<2x8x96xf32> to vector<2x8x8xf32>
    %36 = vector.extract_strided_slice %32 {offsets = [0, 0, 24], sizes = [2, 8, 8], strides = [1, 1, 1]} : vector<2x8x96xf32> to vector<2x8x8xf32>
    %37 = tpu.concatenate %33, %34, %35, %36 in 0 : vector<2x8x8xf32>, vector<2x8x8xf32>, vector<2x8x8xf32>, vector<2x8x8xf32> -> vector<8x8x8xf32>
    %38 = vector.extract_strided_slice %32 {offsets = [0, 0, 32], sizes = [2, 8, 8], strides = [1, 1, 1]} : vector<2x8x96xf32> to vector<2x8x8xf32>
    %39 = vector.extract_strided_slice %32 {offsets = [0, 0, 40], sizes = [2, 8, 8], strides = [1, 1, 1]} : vector<2x8x96xf32> to vector<2x8x8xf32>
    %40 = vector.extract_strided_slice %32 {offsets = [0, 0, 48], sizes = [2, 8, 8], strides = [1, 1, 1]} : vector<2x8x96xf32> to vector<2x8x8xf32>
    %41 = vector.extract_strided_slice %32 {offsets = [0, 0, 56], sizes = [2, 8, 8], strides = [1, 1, 1]} : vector<2x8x96xf32> to vector<2x8x8xf32>
    %42 = tpu.concatenate %38, %39, %40, %41 in 0 : vector<2x8x8xf32>, vector<2x8x8xf32>, vector<2x8x8xf32>, vector<2x8x8xf32> -> vector<8x8x8xf32>
    %43 = vector.extract_strided_slice %32 {offsets = [0, 0, 64], sizes = [2, 8, 8], strides = [1, 1, 1]} : vector<2x8x96xf32> to vector<2x8x8xf32>
    %44 = vector.extract_strided_slice %32 {offsets = [0, 0, 72], sizes = [2, 8, 8], strides = [1, 1, 1]} : vector<2x8x96xf32> to vector<2x8x8xf32>
    %45 = vector.extract_strided_slice %32 {offsets = [0, 0, 80], sizes = [2, 8, 8], strides = [1, 1, 1]} : vector<2x8x96xf32> to vector<2x8x8xf32>
    %46 = vector.extract_strided_slice %32 {offsets = [0, 0, 88], sizes = [2, 8, 8], strides = [1, 1, 1]} : vector<2x8x96xf32> to vector<2x8x8xf32>
    %47 = tpu.concatenate %43, %44, %45, %46 in 0 : vector<2x8x8xf32>, vector<2x8x8xf32>, vector<2x8x8xf32>, vector<2x8x8xf32> -> vector<8x8x8xf32>
    %48 = arith.truncf %37 : vector<8x8x8xf32> to vector<8x8x8xbf16>
    %49 = arith.truncf %42 : vector<8x8x8xf32> to vector<8x8x8xbf16>
    "tpu.trace_start"() <{level = 10 : i32, message = "bqd,bkd->bqk"}> : () -> ()
    %cst_19 = arith.constant dense<0.000000e+00> : vector<8x8x8xf32>
    %50 = tpu.matmul %48, %49, %cst_19 {dimension_numbers = #tpu.dot_dimension_numbers<[2], [2], [1], [1], [0, 0, 0, 1, 1, 1], [0], [0]>} : vector<8x8x8xbf16>, vector<8x8x8xbf16>, vector<8x8x8xf32> -> vector<8x8x8xf32>
    "tpu.trace_stop"() : () -> ()
    %cst_20 = arith.constant 0.353553385 : f32
    %51 = vector.broadcast %cst_20 : f32 to vector<8x8x8xf32>
    %52 = arith.mulf %50, %51 : vector<8x8x8xf32>
    %53 = vector.broadcast %23 : vector<8x1x8xf32> to vector<8x8x8xf32>
    %54 = arith.addf %52, %53 : vector<8x8x8xf32>
    %cst_21 = arith.constant dense<0xFF800000> : vector<8x8xf32>
    %55 = vector.multi_reduction <maximumf>, %54, %cst_21 [2] : vector<8x8x8xf32> to vector<8x8xf32>
    %56 = vector.shape_cast %55 : vector<8x8xf32> to vector<8x8x1xf32>
    %57 = vector.broadcast %56 : vector<8x8x1xf32> to vector<8x8x8xf32>
    %58 = arith.subf %54, %57 : vector<8x8x8xf32>
    %59 = math.exp %58 : vector<8x8x8xf32>
    %cst_22 = arith.constant dense<0.000000e+00> : vector<8x8xf32>
    %60 = vector.multi_reduction <add>, %59, %cst_22 [2] : vector<8x8x8xf32> to vector<8x8xf32>
    %61 = vector.shape_cast %60 : vector<8x8xf32> to vector<8x8x1xf32>
    %62 = tpu.reciprocal %61 {approx = true} : vector<8x8x1xf32> -> vector<8x8x1xf32>
    %63 = vector.broadcast %62 : vector<8x8x1xf32> to vector<8x8x8xf32>
    %64 = arith.mulf %59, %63 : vector<8x8x8xf32>
    %65 = arith.truncf %64 : vector<8x8x8xf32> to vector<8x8x8xbf16>
    %66 = arith.truncf %47 : vector<8x8x8xf32> to vector<8x8x8xbf16>
    "tpu.trace_start"() <{level = 10 : i32, message = "bqk,bkd->bqd"}> : () -> ()
    %cst_23 = arith.constant dense<0.000000e+00> : vector<8x8x8xf32>
    %67 = tpu.matmul %65, %66, %cst_23 {dimension_numbers = #tpu.dot_dimension_numbers<[2], [1], [1], [2], [0, 0, 0, 1, 1, 2], [0], [0]>} : vector<8x8x8xbf16>, vector<8x8x8xbf16>, vector<8x8x8xf32> -> vector<8x8x8xf32>
    "tpu.trace_stop"() : () -> ()
    %68 = vector.shape_cast %67 : vector<8x8x8xf32> to vector<4x16x8xf32>
    %69 = arith.truncf %68 : vector<4x16x8xf32> to vector<4x16x8xbf16>
    %c0_24 = arith.constant 0 : index
    %c0_25 = arith.constant 0 : index
    %c0_26 = arith.constant 0 : index
    %c0_27 = arith.constant 0 : index
    %70 = vector.load %arg7[%c0_24, %c0_25, %c0_26, %c0_27] : memref<2x4x8x32xbf16, #tpu.memory_space<vmem>>, vector<1x4x8x32xbf16>
    %71 = vector.shape_cast %70 : vector<1x4x8x32xbf16> to vector<4x8x32xbf16>
    "tpu.trace_start"() <{level = 10 : i32, message = "ntd,ndh->nth"}> : () -> ()
    %cst_28 = arith.constant dense<0.000000e+00> : vector<4x16x32xf32>
    %72 = tpu.matmul %69, %71, %cst_28 {dimension_numbers = #tpu.dot_dimension_numbers<[2], [1], [1], [2], [0, 0, 0, 1, 1, 2], [0], [0]>} : vector<4x16x8xbf16>, vector<4x8x32xbf16>, vector<4x16x32xf32> -> vector<4x16x32xf32>
    "tpu.trace_stop"() : () -> ()
    %cst_29 = arith.constant dense<0.000000e+00> : vector<16x32xf32>
    %73 = vector.multi_reduction <add>, %72, %cst_29 [0] : vector<4x16x32xf32> to vector<16x32xf32>
    %c0_30 = arith.constant 0 : index
    %c0_31 = arith.constant 0 : index
    %c0_32 = arith.constant 0 : index
    %74 = vector.load %arg8[%c0_30, %c0_31, %c0_32] : memref<2x1x32xf32, #tpu.memory_space<vmem>>, vector<1x1x32xf32>
    %75 = vector.shape_cast %74 : vector<1x1x32xf32> to vector<1x32xf32>
    %76 = vector.broadcast %75 : vector<1x32xf32> to vector<16x32xf32>
    %77 = arith.addf %73, %76 : vector<16x32xf32>
    %78 = arith.addf %77, %22 : vector<16x32xf32>
    %c0_33 = arith.constant 0 : index
    %c0_34 = arith.constant 0 : index
    %c0_35 = arith.constant 0 : index
    %79 = vector.load %arg9[%c0_33, %c0_34, %c0_35] : memref<2x1x32xf32, #tpu.memory_space<vmem>>, vector<1x1x32xf32>
    %80 = vector.shape_cast %79 : vector<1x1x32xf32> to vector<1x32xf32>
    %c0_36 = arith.constant 0 : index
    %c0_37 = arith.constant 0 : index
    %c0_38 = arith.constant 0 : index
    %81 = vector.load %arg10[%c0_36, %c0_37, %c0_38] : memref<2x1x32xf32, #tpu.memory_space<vmem>>, vector<1x1x32xf32>
    %82 = vector.shape_cast %81 : vector<1x1x32xf32> to vector<1x32xf32>
    %cst_39 = arith.constant dense<0.000000e+00> : vector<16xf32>
    %83 = vector.multi_reduction <add>, %78, %cst_39 [1] : vector<16x32xf32> to vector<16xf32>
    %84 = vector.shape_cast %83 : vector<16xf32> to vector<16x1xf32>
    %cst_40 = arith.constant 3.200000e+01 : f32
    %85 = vector.broadcast %cst_40 : f32 to vector<16x1xf32>
    %86 = arith.divf %84, %85 : vector<16x1xf32>
    %87 = vector.broadcast %86 : vector<16x1xf32> to vector<16x32xf32>
    %88 = arith.subf %78, %87 : vector<16x32xf32>
    %89 = arith.mulf %88, %88 : vector<16x32xf32>
    %cst_41 = arith.constant dense<0.000000e+00> : vector<16xf32>
    %90 = vector.multi_reduction <add>, %89, %cst_41 [1] : vector<16x32xf32> to vector<16xf32>
    %91 = vector.shape_cast %90 : vector<16xf32> to vector<16x1xf32>
    %cst_42 = arith.constant 3.200000e+01 : f32
    %92 = vector.broadcast %cst_42 : f32 to vector<16x1xf32>
    %93 = arith.divf %91, %92 : vector<16x1xf32>
    %cst_43 = arith.constant 9.99999996E-13 : f32
    %94 = vector.broadcast %cst_43 : f32 to vector<16x1xf32>
    %95 = arith.addf %93, %94 : vector<16x1xf32>
    %96 = math.rsqrt %95 : vector<16x1xf32>
    %97 = vector.broadcast %96 : vector<16x1xf32> to vector<16x32xf32>
    %98 = arith.mulf %88, %97 : vector<16x32xf32>
    %99 = vector.broadcast %80 : vector<1x32xf32> to vector<16x32xf32>
    %100 = arith.mulf %98, %99 : vector<16x32xf32>
    %101 = vector.broadcast %82 : vector<1x32xf32> to vector<16x32xf32>
    %102 = arith.addf %100, %101 : vector<16x32xf32>
    %c0_44 = arith.constant 0 : index
    %c0_45 = arith.constant 0 : index
    %c0_46 = arith.constant 0 : index
    %103 = vector.load %arg11[%c0_44, %c0_45, %c0_46] : memref<2x32x64xbf16, #tpu.memory_space<vmem>>, vector<1x32x64xbf16>
    %104 = vector.shape_cast %103 : vector<1x32x64xbf16> to vector<32x64xbf16>
    %105 = arith.truncf %102 : vector<16x32xf32> to vector<16x32xbf16>
    %cst_47 = arith.constant dense<0.000000e+00> : vector<16x64xf32>
    %106 = tpu.matmul %105, %104, %cst_47 {dimension_numbers = #tpu.dot_dimension_numbers<[1], [0], [0], [1], [0, 0, 1, 1], [], []>} : vector<16x32xbf16>, vector<32x64xbf16>, vector<16x64xf32> -> vector<16x64xf32>
    %c0_48 = arith.constant 0 : index
    %c0_49 = arith.constant 0 : index
    %c0_50 = arith.constant 0 : index
    %107 = vector.load %arg12[%c0_48, %c0_49, %c0_50] : memref<2x1x64xf32, #tpu.memory_space<vmem>>, vector<1x1x64xf32>
    %108 = vector.shape_cast %107 : vector<1x1x64xf32> to vector<1x64xf32>
    %109 = vector.broadcast %108 : vector<1x64xf32> to vector<16x64xf32>
    %110 = arith.addf %106, %109 : vector<16x64xf32>
    %cst_51 = arith.constant 5.000000e-01 : f32
    %111 = vector.broadcast %cst_51 : f32 to vector<16x64xf32>
    %112 = arith.mulf %111, %110 : vector<16x64xf32>
    %cst_52 = arith.constant 4.471500e-02 : f32
    %113 = vector.broadcast %cst_52 : f32 to vector<16x64xf32>
    %114 = arith.mulf %113, %110 : vector<16x64xf32>
    %115 = arith.mulf %114, %110 : vector<16x64xf32>
    %116 = arith.mulf %115, %110 : vector<16x64xf32>
    %117 = arith.addf %110, %116 : vector<16x64xf32>
    %cst_53 = arith.constant 0.797884583 : f32
    %118 = vector.broadcast %cst_53 : f32 to vector<16x64xf32>
    %119 = arith.mulf %118, %117 : vector<16x64xf32>
    %120 = math.tanh %119 : vector<16x64xf32>
    %cst_54 = arith.constant 1.000000e+00 : f32
    %121 = vector.broadcast %cst_54 : f32 to vector<16x64xf32>
    %122 = arith.addf %121, %120 : vector<16x64xf32>
    %123 = arith.mulf %112, %122 : vector<16x64xf32>
    %c0_55 = arith.constant 0 : index
    %c0_56 = arith.constant 0 : index
    %c0_57 = arith.constant 0 : index
    %124 = vector.load %arg13[%c0_55, %c0_56, %c0_57] : memref<2x64x32xbf16, #tpu.memory_space<vmem>>, vector<1x64x32xbf16>
    %125 = vector.shape_cast %124 : vector<1x64x32xbf16> to vector<64x32xbf16>
    %126 = arith.truncf %123 : vector<16x64xf32> to vector<16x64xbf16>
    %cst_58 = arith.constant dense<0.000000e+00> : vector<16x32xf32>
    %127 = tpu.matmul %126, %125, %cst_58 {dimension_numbers = #tpu.dot_dimension_numbers<[1], [0], [0], [1], [0, 0, 1, 1], [], []>} : vector<16x64xbf16>, vector<64x32xbf16>, vector<16x32xf32> -> vector<16x32xf32>
    %c0_59 = arith.constant 0 : index
    %c0_60 = arith.constant 0 : index
    %c0_61 = arith.constant 0 : index
    %128 = vector.load %arg14[%c0_59, %c0_60, %c0_61] : memref<2x1x32xf32, #tpu.memory_space<vmem>>, vector<1x1x32xf32>
    %129 = vector.shape_cast %128 : vector<1x1x32xf32> to vector<1x32xf32>
    %130 = vector.broadcast %129 : vector<1x32xf32> to vector<16x32xf32>
    %131 = arith.addf %127, %130 : vector<16x32xf32>
    %132 = arith.addf %131, %102 : vector<16x32xf32>
    %c0_62 = arith.constant 0 : index
    %c0_63 = arith.constant 0 : index
    %c0_64 = arith.constant 0 : index
    %133 = vector.load %arg15[%c0_62, %c0_63, %c0_64] : memref<2x1x32xf32, #tpu.memory_space<vmem>>, vector<1x1x32xf32>
    %134 = vector.shape_cast %133 : vector<1x1x32xf32> to vector<1x32xf32>
    %c0_65 = arith.constant 0 : index
    %c0_66 = arith.constant 0 : index
    %c0_67 = arith.constant 0 : index
    %135 = vector.load %arg16[%c0_65, %c0_66, %c0_67] : memref<2x1x32xf32, #tpu.memory_space<vmem>>, vector<1x1x32xf32>
    %136 = vector.shape_cast %135 : vector<1x1x32xf32> to vector<1x32xf32>
    %cst_68 = arith.constant dense<0.000000e+00> : vector<16xf32>
    %137 = vector.multi_reduction <add>, %132, %cst_68 [1] : vector<16x32xf32> to vector<16xf32>
    %138 = vector.shape_cast %137 : vector<16xf32> to vector<16x1xf32>
    %cst_69 = arith.constant 3.200000e+01 : f32
    %139 = vector.broadcast %cst_69 : f32 to vector<16x1xf32>
    %140 = arith.divf %138, %139 : vector<16x1xf32>
    %141 = vector.broadcast %140 : vector<16x1xf32> to vector<16x32xf32>
    %142 = arith.subf %132, %141 : vector<16x32xf32>
    %143 = arith.mulf %142, %142 : vector<16x32xf32>
    %cst_70 = arith.constant dense<0.000000e+00> : vector<16xf32>
    %144 = vector.multi_reduction <add>, %143, %cst_70 [1] : vector<16x32xf32> to vector<16xf32>
    %145 = vector.shape_cast %144 : vector<16xf32> to vector<16x1xf32>
    %cst_71 = arith.constant 3.200000e+01 : f32
    %146 = vector.broadcast %cst_71 : f32 to vector<16x1xf32>
    %147 = arith.divf %145, %146 : vector<16x1xf32>
    %cst_72 = arith.constant 9.99999996E-13 : f32
    %148 = vector.broadcast %cst_72 : f32 to vector<16x1xf32>
    %149 = arith.addf %147, %148 : vector<16x1xf32>
    %150 = math.rsqrt %149 : vector<16x1xf32>
    %151 = vector.broadcast %150 : vector<16x1xf32> to vector<16x32xf32>
    %152 = arith.mulf %142, %151 : vector<16x32xf32>
    %153 = vector.broadcast %134 : vector<1x32xf32> to vector<16x32xf32>
    %154 = arith.mulf %152, %153 : vector<16x32xf32>
    %155 = vector.broadcast %136 : vector<1x32xf32> to vector<16x32xf32>
    %156 = arith.addf %154, %155 : vector<16x32xf32>
    %c1 = arith.constant 1 : index
    %c0_73 = arith.constant 0 : index
    %c0_74 = arith.constant 0 : index
    %157 = vector.load %arg5[%c1, %c0_73, %c0_74] : memref<2x32x96xbf16, #tpu.memory_space<vmem>>, vector<1x32x96xbf16>
    %158 = vector.shape_cast %157 : vector<1x32x96xbf16> to vector<32x96xbf16>
    %159 = arith.truncf %156 : vector<16x32xf32> to vector<16x32xbf16>
    %cst_75 = arith.constant dense<0.000000e+00> : vector<16x96xf32>
    %160 = tpu.matmul %159, %158, %cst_75 {dimension_numbers = #tpu.dot_dimension_numbers<[1], [0], [0], [1], [0, 0, 1, 1], [], []>} : vector<16x32xbf16>, vector<32x96xbf16>, vector<16x96xf32> -> vector<16x96xf32>
    %c1_76 = arith.constant 1 : index
    %c0_77 = arith.constant 0 : index
    %c0_78 = arith.constant 0 : index
    %161 = vector.load %arg6[%c1_76, %c0_77, %c0_78] : memref<2x1x96xf32, #tpu.memory_space<vmem>>, vector<1x1x96xf32>
    %162 = vector.shape_cast %161 : vector<1x1x96xf32> to vector<1x96xf32>
    %163 = vector.broadcast %162 : vector<1x96xf32> to vector<16x96xf32>
    %164 = arith.addf %160, %163 : vector<16x96xf32>
    %165 = vector.shape_cast %164 : vector<16x96xf32> to vector<2x8x96xf32>
    %166 = vector.extract_strided_slice %165 {offsets = [0, 0, 0], sizes = [2, 8, 8], strides = [1, 1, 1]} : vector<2x8x96xf32> to vector<2x8x8xf32>
    %167 = vector.extract_strided_slice %165 {offsets = [0, 0, 8], sizes = [2, 8, 8], strides = [1, 1, 1]} : vector<2x8x96xf32> to vector<2x8x8xf32>
    %168 = vector.extract_strided_slice %165 {offsets = [0, 0, 16], sizes = [2, 8, 8], strides = [1, 1, 1]} : vector<2x8x96xf32> to vector<2x8x8xf32>
    %169 = vector.extract_strided_slice %165 {offsets = [0, 0, 24], sizes = [2, 8, 8], strides = [1, 1, 1]} : vector<2x8x96xf32> to vector<2x8x8xf32>
    %170 = tpu.concatenate %166, %167, %168, %169 in 0 : vector<2x8x8xf32>, vector<2x8x8xf32>, vector<2x8x8xf32>, vector<2x8x8xf32> -> vector<8x8x8xf32>
    %171 = vector.extract_strided_slice %165 {offsets = [0, 0, 32], sizes = [2, 8, 8], strides = [1, 1, 1]} : vector<2x8x96xf32> to vector<2x8x8xf32>
    %172 = vector.extract_strided_slice %165 {offsets = [0, 0, 40], sizes = [2, 8, 8], strides = [1, 1, 1]} : vector<2x8x96xf32> to vector<2x8x8xf32>
    %173 = vector.extract_strided_slice %165 {offsets = [0, 0, 48], sizes = [2, 8, 8], strides = [1, 1, 1]} : vector<2x8x96xf32> to vector<2x8x8xf32>
    %174 = vector.extract_strided_slice %165 {offsets = [0, 0, 56], sizes = [2, 8, 8], strides = [1, 1, 1]} : vector<2x8x96xf32> to vector<2x8x8xf32>
    %175 = tpu.concatenate %171, %172, %173, %174 in 0 : vector<2x8x8xf32>, vector<2x8x8xf32>, vector<2x8x8xf32>, vector<2x8x8xf32> -> vector<8x8x8xf32>
    %176 = vector.extract_strided_slice %165 {offsets = [0, 0, 64], sizes = [2, 8, 8], strides = [1, 1, 1]} : vector<2x8x96xf32> to vector<2x8x8xf32>
    %177 = vector.extract_strided_slice %165 {offsets = [0, 0, 72], sizes = [2, 8, 8], strides = [1, 1, 1]} : vector<2x8x96xf32> to vector<2x8x8xf32>
    %178 = vector.extract_strided_slice %165 {offsets = [0, 0, 80], sizes = [2, 8, 8], strides = [1, 1, 1]} : vector<2x8x96xf32> to vector<2x8x8xf32>
    %179 = vector.extract_strided_slice %165 {offsets = [0, 0, 88], sizes = [2, 8, 8], strides = [1, 1, 1]} : vector<2x8x96xf32> to vector<2x8x8xf32>
    %180 = tpu.concatenate %176, %177, %178, %179 in 0 : vector<2x8x8xf32>, vector<2x8x8xf32>, vector<2x8x8xf32>, vector<2x8x8xf32> -> vector<8x8x8xf32>
    %181 = arith.truncf %170 : vector<8x8x8xf32> to vector<8x8x8xbf16>
    %182 = arith.truncf %175 : vector<8x8x8xf32> to vector<8x8x8xbf16>
    "tpu.trace_start"() <{level = 10 : i32, message = "bqd,bkd->bqk"}> : () -> ()
    %cst_79 = arith.constant dense<0.000000e+00> : vector<8x8x8xf32>
    %183 = tpu.matmul %181, %182, %cst_79 {dimension_numbers = #tpu.dot_dimension_numbers<[2], [2], [1], [1], [0, 0, 0, 1, 1, 1], [0], [0]>} : vector<8x8x8xbf16>, vector<8x8x8xbf16>, vector<8x8x8xf32> -> vector<8x8x8xf32>
    "tpu.trace_stop"() : () -> ()
    %cst_80 = arith.constant 0.353553385 : f32
    %184 = vector.broadcast %cst_80 : f32 to vector<8x8x8xf32>
    %185 = arith.mulf %183, %184 : vector<8x8x8xf32>
    %186 = vector.broadcast %23 : vector<8x1x8xf32> to vector<8x8x8xf32>
    %187 = arith.addf %185, %186 : vector<8x8x8xf32>
    %cst_81 = arith.constant dense<0xFF800000> : vector<8x8xf32>
    %188 = vector.multi_reduction <maximumf>, %187, %cst_81 [2] : vector<8x8x8xf32> to vector<8x8xf32>
    %189 = vector.shape_cast %188 : vector<8x8xf32> to vector<8x8x1xf32>
    %190 = vector.broadcast %189 : vector<8x8x1xf32> to vector<8x8x8xf32>
    %191 = arith.subf %187, %190 : vector<8x8x8xf32>
    %192 = math.exp %191 : vector<8x8x8xf32>
    %cst_82 = arith.constant dense<0.000000e+00> : vector<8x8xf32>
    %193 = vector.multi_reduction <add>, %192, %cst_82 [2] : vector<8x8x8xf32> to vector<8x8xf32>
    %194 = vector.shape_cast %193 : vector<8x8xf32> to vector<8x8x1xf32>
    %195 = tpu.reciprocal %194 {approx = true} : vector<8x8x1xf32> -> vector<8x8x1xf32>
    %196 = vector.broadcast %195 : vector<8x8x1xf32> to vector<8x8x8xf32>
    %197 = arith.mulf %192, %196 : vector<8x8x8xf32>
    %198 = arith.truncf %197 : vector<8x8x8xf32> to vector<8x8x8xbf16>
    %199 = arith.truncf %180 : vector<8x8x8xf32> to vector<8x8x8xbf16>
    "tpu.trace_start"() <{level = 10 : i32, message = "bqk,bkd->bqd"}> : () -> ()
    %cst_83 = arith.constant dense<0.000000e+00> : vector<8x8x8xf32>
    %200 = tpu.matmul %198, %199, %cst_83 {dimension_numbers = #tpu.dot_dimension_numbers<[2], [1], [1], [2], [0, 0, 0, 1, 1, 2], [0], [0]>} : vector<8x8x8xbf16>, vector<8x8x8xbf16>, vector<8x8x8xf32> -> vector<8x8x8xf32>
    "tpu.trace_stop"() : () -> ()
    %201 = vector.shape_cast %200 : vector<8x8x8xf32> to vector<4x16x8xf32>
    %202 = arith.truncf %201 : vector<4x16x8xf32> to vector<4x16x8xbf16>
    %c1_84 = arith.constant 1 : index
    %c0_85 = arith.constant 0 : index
    %c0_86 = arith.constant 0 : index
    %c0_87 = arith.constant 0 : index
    %203 = vector.load %arg7[%c1_84, %c0_85, %c0_86, %c0_87] : memref<2x4x8x32xbf16, #tpu.memory_space<vmem>>, vector<1x4x8x32xbf16>
    %204 = vector.shape_cast %203 : vector<1x4x8x32xbf16> to vector<4x8x32xbf16>
    "tpu.trace_start"() <{level = 10 : i32, message = "ntd,ndh->nth"}> : () -> ()
    %cst_88 = arith.constant dense<0.000000e+00> : vector<4x16x32xf32>
    %205 = tpu.matmul %202, %204, %cst_88 {dimension_numbers = #tpu.dot_dimension_numbers<[2], [1], [1], [2], [0, 0, 0, 1, 1, 2], [0], [0]>} : vector<4x16x8xbf16>, vector<4x8x32xbf16>, vector<4x16x32xf32> -> vector<4x16x32xf32>
    "tpu.trace_stop"() : () -> ()
    %cst_89 = arith.constant dense<0.000000e+00> : vector<16x32xf32>
    %206 = vector.multi_reduction <add>, %205, %cst_89 [0] : vector<4x16x32xf32> to vector<16x32xf32>
    %c1_90 = arith.constant 1 : index
    %c0_91 = arith.constant 0 : index
    %c0_92 = arith.constant 0 : index
    %207 = vector.load %arg8[%c1_90, %c0_91, %c0_92] : memref<2x1x32xf32, #tpu.memory_space<vmem>>, vector<1x1x32xf32>
    %208 = vector.shape_cast %207 : vector<1x1x32xf32> to vector<1x32xf32>
    %209 = vector.broadcast %208 : vector<1x32xf32> to vector<16x32xf32>
    %210 = arith.addf %206, %209 : vector<16x32xf32>
    %211 = arith.addf %210, %156 : vector<16x32xf32>
    %c1_93 = arith.constant 1 : index
    %c0_94 = arith.constant 0 : index
    %c0_95 = arith.constant 0 : index
    %212 = vector.load %arg9[%c1_93, %c0_94, %c0_95] : memref<2x1x32xf32, #tpu.memory_space<vmem>>, vector<1x1x32xf32>
    %213 = vector.shape_cast %212 : vector<1x1x32xf32> to vector<1x32xf32>
    %c1_96 = arith.constant 1 : index
    %c0_97 = arith.constant 0 : index
    %c0_98 = arith.constant 0 : index
    %214 = vector.load %arg10[%c1_96, %c0_97, %c0_98] : memref<2x1x32xf32, #tpu.memory_space<vmem>>, vector<1x1x32xf32>
    %215 = vector.shape_cast %214 : vector<1x1x32xf32> to vector<1x32xf32>
    %cst_99 = arith.constant dense<0.000000e+00> : vector<16xf32>
    %216 = vector.multi_reduction <add>, %211, %cst_99 [1] : vector<16x32xf32> to vector<16xf32>
    %217 = vector.shape_cast %216 : vector<16xf32> to vector<16x1xf32>
    %cst_100 = arith.constant 3.200000e+01 : f32
    %218 = vector.broadcast %cst_100 : f32 to vector<16x1xf32>
    %219 = arith.divf %217, %218 : vector<16x1xf32>
    %220 = vector.broadcast %219 : vector<16x1xf32> to vector<16x32xf32>
    %221 = arith.subf %211, %220 : vector<16x32xf32>
    %222 = arith.mulf %221, %221 : vector<16x32xf32>
    %cst_101 = arith.constant dense<0.000000e+00> : vector<16xf32>
    %223 = vector.multi_reduction <add>, %222, %cst_101 [1] : vector<16x32xf32> to vector<16xf32>
    %224 = vector.shape_cast %223 : vector<16xf32> to vector<16x1xf32>
    %cst_102 = arith.constant 3.200000e+01 : f32
    %225 = vector.broadcast %cst_102 : f32 to vector<16x1xf32>
    %226 = arith.divf %224, %225 : vector<16x1xf32>
    %cst_103 = arith.constant 9.99999996E-13 : f32
    %227 = vector.broadcast %cst_103 : f32 to vector<16x1xf32>
    %228 = arith.addf %226, %227 : vector<16x1xf32>
    %229 = math.rsqrt %228 : vector<16x1xf32>
    %230 = vector.broadcast %229 : vector<16x1xf32> to vector<16x32xf32>
    %231 = arith.mulf %221, %230 : vector<16x32xf32>
    %232 = vector.broadcast %213 : vector<1x32xf32> to vector<16x32xf32>
    %233 = arith.mulf %231, %232 : vector<16x32xf32>
    %234 = vector.broadcast %215 : vector<1x32xf32> to vector<16x32xf32>
    %235 = arith.addf %233, %234 : vector<16x32xf32>
    %c1_104 = arith.constant 1 : index
    %c0_105 = arith.constant 0 : index
    %c0_106 = arith.constant 0 : index
    %236 = vector.load %arg11[%c1_104, %c0_105, %c0_106] : memref<2x32x64xbf16, #tpu.memory_space<vmem>>, vector<1x32x64xbf16>
    %237 = vector.shape_cast %236 : vector<1x32x64xbf16> to vector<32x64xbf16>
    %238 = arith.truncf %235 : vector<16x32xf32> to vector<16x32xbf16>
    %cst_107 = arith.constant dense<0.000000e+00> : vector<16x64xf32>
    %239 = tpu.matmul %238, %237, %cst_107 {dimension_numbers = #tpu.dot_dimension_numbers<[1], [0], [0], [1], [0, 0, 1, 1], [], []>} : vector<16x32xbf16>, vector<32x64xbf16>, vector<16x64xf32> -> vector<16x64xf32>
    %c1_108 = arith.constant 1 : index
    %c0_109 = arith.constant 0 : index
    %c0_110 = arith.constant 0 : index
    %240 = vector.load %arg12[%c1_108, %c0_109, %c0_110] : memref<2x1x64xf32, #tpu.memory_space<vmem>>, vector<1x1x64xf32>
    %241 = vector.shape_cast %240 : vector<1x1x64xf32> to vector<1x64xf32>
    %242 = vector.broadcast %241 : vector<1x64xf32> to vector<16x64xf32>
    %243 = arith.addf %239, %242 : vector<16x64xf32>
    %cst_111 = arith.constant 5.000000e-01 : f32
    %244 = vector.broadcast %cst_111 : f32 to vector<16x64xf32>
    %245 = arith.mulf %244, %243 : vector<16x64xf32>
    %cst_112 = arith.constant 4.471500e-02 : f32
    %246 = vector.broadcast %cst_112 : f32 to vector<16x64xf32>
    %247 = arith.mulf %246, %243 : vector<16x64xf32>
    %248 = arith.mulf %247, %243 : vector<16x64xf32>
    %249 = arith.mulf %248, %243 : vector<16x64xf32>
    %250 = arith.addf %243, %249 : vector<16x64xf32>
    %cst_113 = arith.constant 0.797884583 : f32
    %251 = vector.broadcast %cst_113 : f32 to vector<16x64xf32>
    %252 = arith.mulf %251, %250 : vector<16x64xf32>
    %253 = math.tanh %252 : vector<16x64xf32>
    %cst_114 = arith.constant 1.000000e+00 : f32
    %254 = vector.broadcast %cst_114 : f32 to vector<16x64xf32>
    %255 = arith.addf %254, %253 : vector<16x64xf32>
    %256 = arith.mulf %245, %255 : vector<16x64xf32>
    %c1_115 = arith.constant 1 : index
    %c0_116 = arith.constant 0 : index
    %c0_117 = arith.constant 0 : index
    %257 = vector.load %arg13[%c1_115, %c0_116, %c0_117] : memref<2x64x32xbf16, #tpu.memory_space<vmem>>, vector<1x64x32xbf16>
    %258 = vector.shape_cast %257 : vector<1x64x32xbf16> to vector<64x32xbf16>
    %259 = arith.truncf %256 : vector<16x64xf32> to vector<16x64xbf16>
    %cst_118 = arith.constant dense<0.000000e+00> : vector<16x32xf32>
    %260 = tpu.matmul %259, %258, %cst_118 {dimension_numbers = #tpu.dot_dimension_numbers<[1], [0], [0], [1], [0, 0, 1, 1], [], []>} : vector<16x64xbf16>, vector<64x32xbf16>, vector<16x32xf32> -> vector<16x32xf32>
    %c1_119 = arith.constant 1 : index
    %c0_120 = arith.constant 0 : index
    %c0_121 = arith.constant 0 : index
    %261 = vector.load %arg14[%c1_119, %c0_120, %c0_121] : memref<2x1x32xf32, #tpu.memory_space<vmem>>, vector<1x1x32xf32>
    %262 = vector.shape_cast %261 : vector<1x1x32xf32> to vector<1x32xf32>
    %263 = vector.broadcast %262 : vector<1x32xf32> to vector<16x32xf32>
    %264 = arith.addf %260, %263 : vector<16x32xf32>
    %265 = arith.addf %264, %235 : vector<16x32xf32>
    %c1_122 = arith.constant 1 : index
    %c0_123 = arith.constant 0 : index
    %c0_124 = arith.constant 0 : index
    %266 = vector.load %arg15[%c1_122, %c0_123, %c0_124] : memref<2x1x32xf32, #tpu.memory_space<vmem>>, vector<1x1x32xf32>
    %267 = vector.shape_cast %266 : vector<1x1x32xf32> to vector<1x32xf32>
    %c1_125 = arith.constant 1 : index
    %c0_126 = arith.constant 0 : index
    %c0_127 = arith.constant 0 : index
    %268 = vector.load %arg16[%c1_125, %c0_126, %c0_127] : memref<2x1x32xf32, #tpu.memory_space<vmem>>, vector<1x1x32xf32>
    %269 = vector.shape_cast %268 : vector<1x1x32xf32> to vector<1x32xf32>
    %cst_128 = arith.constant dense<0.000000e+00> : vector<16xf32>
    %270 = vector.multi_reduction <add>, %265, %cst_128 [1] : vector<16x32xf32> to vector<16xf32>
    %271 = vector.shape_cast %270 : vector<16xf32> to vector<16x1xf32>
    %cst_129 = arith.constant 3.200000e+01 : f32
    %272 = vector.broadcast %cst_129 : f32 to vector<16x1xf32>
    %273 = arith.divf %271, %272 : vector<16x1xf32>
    %274 = vector.broadcast %273 : vector<16x1xf32> to vector<16x32xf32>
    %275 = arith.subf %265, %274 : vector<16x32xf32>
    %276 = arith.mulf %275, %275 : vector<16x32xf32>
    %cst_130 = arith.constant dense<0.000000e+00> : vector<16xf32>
    %277 = vector.multi_reduction <add>, %276, %cst_130 [1] : vector<16x32xf32> to vector<16xf32>
    %278 = vector.shape_cast %277 : vector<16xf32> to vector<16x1xf32>
    %cst_131 = arith.constant 3.200000e+01 : f32
    %279 = vector.broadcast %cst_131 : f32 to vector<16x1xf32>
    %280 = arith.divf %278, %279 : vector<16x1xf32>
    %cst_132 = arith.constant 9.99999996E-13 : f32
    %281 = vector.broadcast %cst_132 : f32 to vector<16x1xf32>
    %282 = arith.addf %280, %281 : vector<16x1xf32>
    %283 = math.rsqrt %282 : vector<16x1xf32>
    %284 = vector.broadcast %283 : vector<16x1xf32> to vector<16x32xf32>
    %285 = arith.mulf %275, %284 : vector<16x32xf32>
    %286 = vector.broadcast %267 : vector<1x32xf32> to vector<16x32xf32>
    %287 = arith.mulf %285, %286 : vector<16x32xf32>
    %288 = vector.broadcast %269 : vector<1x32xf32> to vector<16x32xf32>
    %289 = arith.addf %287, %288 : vector<16x32xf32>
    %290 = vector.shape_cast %289 : vector<16x32xf32> to vector<2x8x32xf32>
    %291 = vector.extract_strided_slice %290 {offsets = [0, 0, 0], sizes = [2, 1, 32], strides = [1, 1, 1]} : vector<2x8x32xf32> to vector<2x1x32xf32>
    %292 = vector.shape_cast %291 : vector<2x1x32xf32> to vector<2x32xf32>
    %c0_133 = arith.constant 0 : index
    %c0_134 = arith.constant 0 : index
    %293 = vector.load %arg17[%c0_133, %c0_134] : memref<32x32xbf16, #tpu.memory_space<vmem>>, vector<32x32xbf16>
    %294 = arith.truncf %292 : vector<2x32xf32> to vector<2x32xbf16>
    %cst_135 = arith.constant dense<0.000000e+00> : vector<2x32xf32>
    %295 = tpu.matmul %294, %293, %cst_135 {dimension_numbers = #tpu.dot_dimension_numbers<[1], [0], [0], [1], [0, 0, 1, 1], [], []>} : vector<2x32xbf16>, vector<32x32xbf16>, vector<2x32xf32> -> vector<2x32xf32>
    %c0_136 = arith.constant 0 : index
    %c0_137 = arith.constant 0 : index
    %296 = vector.load %arg18[%c0_136, %c0_137] : memref<1x32xf32, #tpu.memory_space<vmem>>, vector<1x32xf32>
    %297 = vector.broadcast %296 : vector<1x32xf32> to vector<2x32xf32>
    %298 = arith.addf %295, %297 : vector<2x32xf32>
    %299 = math.tanh %298 : vector<2x32xf32>
    %c0_138 = arith.constant 0 : index
    %c0_139 = arith.constant 0 : index
    %300 = vector.load %arg19[%c0_138, %c0_139] : memref<2x32xf32, #tpu.memory_space<vmem>>, vector<2x32xf32>
    tpu.vector_store %arg19[%c0_138, %c0_139], %299 {strides = array<i32>} : memref<2x32xf32, #tpu.memory_space<vmem>>, vector<2x32xf32>,
    return
  }
  func.func @transform_0(%arg0: i32) -> (i32, i32) {
    %c0_i32 = arith.constant 0 : i32
    %c0_i32_0 = arith.constant 0 : i32
    %c0_i32_1 = arith.constant 0 : i32
    return %c0_i32, %c0_i32_0 : i32, i32
  }
  func.func @transform_1(%arg0: i32) -> (i32, i32, i32) {
    %c0_i32 = arith.constant 0 : i32
    %c0_i32_0 = arith.constant 0 : i32
    %c0_i32_1 = arith.constant 0 : i32
    %c0_i32_2 = arith.constant 0 : i32
    return %c0_i32, %c0_i32_0, %c0_i32_1 : i32, i32, i32
  }
  func.func @transform_2(%arg0: i32) -> (i32, i32) {
    %c0_i32 = arith.constant 0 : i32
    %c0_i32_0 = arith.constant 0 : i32
    %c0_i32_1 = arith.constant 0 : i32
    return %c0_i32, %c0_i32_0 : i32, i32
  }
  func.func @transform_3(%arg0: i32) -> (i32, i32) {
    %c0_i32 = arith.constant 0 : i32
    %c0_i32_0 = arith.constant 0 : i32
    %c0_i32_1 = arith.constant 0 : i32
    return %c0_i32, %c0_i32_0 : i32, i32
  }
  func.func @transform_4(%arg0: i32) -> (i32, i32, i32) {
    %c0_i32 = arith.constant 0 : i32
    %c0_i32_0 = arith.constant 0 : i32
    %c0_i32_1 = arith.constant 0 : i32
    %c0_i32_2 = arith.constant 0 : i32
    return %c0_i32, %c0_i32_0, %c0_i32_1 : i32, i32, i32
  }
  func.func @transform_5(%arg0: i32) -> (i32, i32, i32) {
    %c0_i32 = arith.constant 0 : i32
    %c0_i32_0 = arith.constant 0 : i32
    %c0_i32_1 = arith.constant 0 : i32
    %c0_i32_2 = arith.constant 0 : i32
    return %c0_i32, %c0_i32_0, %c0_i32_1 : i32, i32, i32
  }
  func.func @transform_6(%arg0: i32) -> (i32, i32, i32, i32) {
    %c0_i32 = arith.constant 0 : i32
    %c0_i32_0 = arith.constant 0 : i32
    %c0_i32_1 = arith.constant 0 : i32
    %c0_i32_2 = arith.constant 0 : i32
    %c0_i32_3 = arith.constant 0 : i32
    return %c0_i32, %c0_i32_0, %c0_i32_1, %c0_i32_2 : i32, i32, i32, i32
  }
  func.func @transform_7(%arg0: i32) -> (i32, i32, i32) {
    %c0_i32 = arith.constant 0 : i32
    %c0_i32_0 = arith.constant 0 : i32
    %c0_i32_1 = arith.constant 0 : i32
    %c0_i32_2 = arith.constant 0 : i32
    return %c0_i32, %c0_i32_0, %c0_i32_1 : i32, i32, i32
  }
  func.func @transform_8(%arg0: i32) -> (i32, i32, i32) {
    %c0_i32 = arith.constant 0 : i32
    %c0_i32_0 = arith.constant 0 : i32
    %c0_i32_1 = arith.constant 0 : i32
    %c0_i32_2 = arith.constant 0 : i32
    return %c0_i32, %c0_i32_0, %c0_i32_1 : i32, i32, i32
  }
  func.func @transform_9(%arg0: i32) -> (i32, i32, i32) {
    %c0_i32 = arith.constant 0 : i32
    %c0_i32_0 = arith.constant 0 : i32
    %c0_i32_1 = arith.constant 0 : i32
    %c0_i32_2 = arith.constant 0 : i32
    return %c0_i32, %c0_i32_0, %c0_i32_1 : i32, i32, i32
  }
  func.func @transform_10(%arg0: i32) -> (i32, i32, i32) {
    %c0_i32 = arith.constant 0 : i32
    %c0_i32_0 = arith.constant 0 : i32
    %c0_i32_1 = arith.constant 0 : i32
    %c0_i32_2 = arith.constant 0 : i32
    return %c0_i32, %c0_i32_0, %c0_i32_1 : i32, i32, i32
  }
  func.func @transform_11(%arg0: i32) -> (i32, i32, i32) {
    %c0_i32 = arith.constant 0 : i32
    %c0_i32_0 = arith.constant 0 : i32
    %c0_i32_1 = arith.constant 0 : i32
    %c0_i32_2 = arith.constant 0 : i32
    return %c0_i32, %c0_i32_0, %c0_i32_1 : i32, i32, i32
  }
  func.func @transform_12(%arg0: i32) -> (i32, i32, i32) {
    %c0_i32 = arith.constant 0 : i32
    %c0_i32_0 = arith.constant 0 : i32
    %c0_i32_1 = arith.constant 0 : i32
    %c0_i32_2 = arith.constant 0 : i32
    return %c0_i32, %c0_i32_0, %c0_i32_1 : i32, i32, i32
  }
  func.func @transform_13(%arg0: i32) -> (i32, i32, i32) {
    %c0_i32 = arith.constant 0 : i32
    %c0_i32_0 = arith.constant 0 : i32
    %c0_i32_1 = arith.constant 0 : i32
    %c0_i32_2 = arith.constant 0 : i32
    return %c0_i32, %c0_i32_0, %c0_i32_1 : i32, i32, i32
  }
  func.func @transform_14(%arg0: i32) -> (i32, i32, i32) {
    %c0_i32 = arith.constant 0 : i32
    %c0_i32_0 = arith.constant 0 : i32
    %c0_i32_1 = arith.constant 0 : i32
    %c0_i32_2 = arith.constant 0 : i32
    return %c0_i32, %c0_i32_0, %c0_i32_1 : i32, i32, i32
  }
  func.func @transform_15(%arg0: i32) -> (i32, i32, i32) {
    %c0_i32 = arith.constant 0 : i32
    %c0_i32_0 = arith.constant 0 : i32
    %c0_i32_1 = arith.constant 0 : i32
    %c0_i32_2 = arith.constant 0 : i32
    return %c0_i32, %c0_i32_0, %c0_i32_1 : i32, i32, i32
  }
  func.func @transform_16(%arg0: i32) -> (i32, i32) {
    %c0_i32 = arith.constant 0 : i32
    %c0_i32_0 = arith.constant 0 : i32
    %c0_i32_1 = arith.constant 0 : i32
    return %c0_i32, %c0_i32_0 : i32, i32
  }
  func.func @transform_17(%arg0: i32) -> (i32, i32) {
    %c0_i32 = arith.constant 0 : i32
    %c0_i32_0 = arith.constant 0 : i32
    %c0_i32_1 = arith.constant 0 : i32
    return %c0_i32, %c0_i32_0 : i32, i32
  }
  func.func @transform_18(%arg0: i32) -> (i32, i32) {
    %c0_i32 = arith.constant 0 : i32
    %c0_i32_0 = arith.constant 0 : i32
    %c0_i32_1 = arith.constant 0 : i32
    return %c0_i32, %c0_i32_0 : i32, i32
  }
}

</mosaic_0001>

<bundles_post_ra>
// kernel: bert_encoder_forward.1
= control target key start
LH: loop header
LB: loop body
LE: loop exit
PB: predicated region body
PF: predicated region fallthrough
CT: control target
= control target key end

     0   :  { %s4758_s0 = inlined_call_operand.vmem [shape: f32[16,32], index: 0, kind: input, shape index: {}]   ;;  %s4759_s1 = inlined_call_operand.vmem [shape: f32[8,1,8], index: 1, kind: input, shape index: {}]   ;;  %s4760_s2 = inlined_call_operand.vmem [shape: f32[1,32], index: 2, kind: input, shape index: {}]   ;;  %s4761_s3 = inlined_call_operand.vmem [shape: f32[1,32], index: 3, kind: input, shape index: {}]   ;;  %s4762_s4 = inlined_call_operand.vmem [shape: bf16[2,32,96], index: 4, kind: input, shape index: {}]   ;;  %s4763_s5 = inlined_call_operand.vmem [shape: f32[2,1,96], index: 5, kind: input, shape index: {}]   ;;  %s4764_s6 = inlined_call_operand.vmem [shape: bf16[2,4,8,32], index: 6, kind: input, shape index: {}]   ;;  %s4765_s7 = inlined_call_operand.vmem [shape: f32[2,1,32], index: 7, kind: input, shape index: {}]   ;;  %s4766_s8 = inlined_call_operand.vmem [shape: f32[2,1,32], index: 8, kind: input, shape index: {}]   ;;  %s4767_s9 = inlined_call_operand.vmem [shape: f32[2,1,32], index: 9, kind: input, shape index: {}]   ;;  %s4768_s10 = inlined_call_operand.vmem [shape: bf16[2,32,64], index: 10, kind: input, shape index: {}]   ;;  %s4769_s11 = inlined_call_operand.vmem [shape: f32[2,1,64], index: 11, kind: input, shape index: {}]   ;;  %s4770_s12 = inlined_call_operand.vmem [shape: bf16[2,64,32], index: 12, kind: input, shape index: {}]   ;;  %s4771_s13 = inlined_call_operand.vmem [shape: f32[2,1,32], index: 13, kind: input, shape index: {}]   ;;  %s4772_s14 = inlined_call_operand.vmem [shape: f32[2,1,32], index: 14, kind: input, shape index: {}]   ;;  %s4773_s15 = inlined_call_operand.vmem [shape: f32[2,1,32], index: 15, kind: input, shape index: {}]   ;;  %s4774_s16 = inlined_call_operand.vmem [shape: bf16[32,32], index: 16, kind: input, shape index: {}]   ;;  %s4775_s17 = inlined_call_operand.vmem [shape: f32[1,32], index: 17, kind: input, shape index: {}]   ;;  %s4776_s18 = inlined_call_operand.hbm [shape: f32[2,32], index: 18, kind: output, shape index: {}]  }
   0x1   :  { %4779 = sst [smem:[#allocation5_spill]] %s4758_s0 }
   0x2   :  { %4780 = sst [smem:[#allocation6_spill]] %s4759_s1 }
   0x3   :  { %4781 = sst [smem:[#allocation7_spill]] %s4760_s2 }
   0x4   :  { %s4782_s29 = sld [smem:[#allocation5_spill]]  ;;  %vm65_vm0 = vcmask 261120  }
   0xa   :  { %v61_v0 = vld [vmem:[%s4782_s29] sm:$0xff]  ;;  %v62_v1 = vld [vmem:[%s4782_s29 + $0x8] sm:$0xff] }
   0xb   :  { %v66_v2 = vsel %vm65_vm0, %v61_v0, 0.0  ;;  %v69_v3 = vsel %vm65_vm0, %v62_v1, 0.0 }
   0xc   :  { %67 = vadd.xlane.f32.xlu0 %v66_v2 }
  0x10   :  { %70 = vadd.xlane.f32.xlu0 %v69_v3 }
  0x11   :  { %23 = vsyncpa [#allocation3], 0  ;;  %v3770_v14 = vld [vmem:[%s4762_s4] sm:$0xff]   ;;  %v3914_v15 = vmov 0.0   ;;  %v3771_v16 = vld [vmem:[%s4762_s4 + $0x8] sm:$0xff]   ;;  %vm3915_vm1 = vmmov 0  }
  0x12   :  { %3428 = vmatprep.subr.bf16.mxu0 %v3914_v15  ;;  %3436 = vmatprep.subr.bf16.mxu1 %v3914_v15  ;;  %s4783_s23 = sld [smem:[#allocation7_spill]]  ;;  %v3204_v29 = vld [vmem:[%s4761_s3] ss:$0 sm:$0xff]  ;;  %s3916_s3 = smov 112   ;;  %vm216_vm2 = vcmask 64512   ;;  %vm771_vm3 = vcmask 1043456  }
  0x13   :  { %3429 = vmatpush3.bf16.msra.mxu0 %v3770_v14  ;;  %3432 = vmatprep.mubr.msk.bf16.mxu0 %vm3915_vm1, %v3914_v15  ;;  %v3205_v34 = vld [vmem:[%s4763_s5] ss:$0 sm:$0xff]  ;;  %s3917_s28 = smov 120   ;;  %s3918_s29 = smov 104   ;;  %vm1542_vm4 = vcmask 523264   ;;  %vm3128_vm5 = vcmask 1041409  }
  0x14   :  { %3430 = vmatprep.subr.bf16.mxu0 %v3914_v15  ;;  %3438 = vmatprep.mubr.msk.bf16.mxu1 %vm3915_vm1, %v3914_v15  ;;  %s3919_s30 = smov 96   ;;  %s3920_s0 = smov 64   ;;  %vm3187_vm6 = vcmask 254976  }
  0x15   :  { %s4784_s20 = sld [smem:[#allocation6_spill]] }
  0x17   :  { %3431 = vmatpush3.bf16.msra.mxu0 %v3771_v16 }
  0x18   :  { %3442 = vmatprep.subr.bf16.mxu0 %v3914_v15  ;;  %v3203_v25 = vld [vmem:[%s4783_s23] ss:$0 sm:$0xff] }
  0x1b   :  { %v3218_v14 = vld [vmem:[%s4784_s20 + $0x1] ss:$0 sm:$0xff] }
  0x99   :  { %v68_v4 = vpop.xlane.xlu0 %67 }
  0x9a   :  { %v73_v5 = vmul.f32 0.03125, %v68_v4 }
  0x9c   :  { %v75_v6 = vsub.f32 %v61_v0, %v73_v5 }
  0x9d   :  { %v71_v7 = vpop.xlane.xlu0 %70 }
  0x9e   :  { %v74_v8 = vmul.f32 0.03125, %v71_v7  ;;  %v77_v9 = vmul.f32 %v75_v6, %v75_v6 }
  0xa0   :  { %v76_v10 = vsub.f32 %v62_v1, %v74_v8  ;;  %v79_v11 = vsel %vm65_vm0, %v77_v9, 0.0 }
  0xa1   :  { %80 = vadd.xlane.f32.xlu1 %v79_v11 }
  0xa2   :  { %v78_v12 = vmul.f32 %v76_v10, %v76_v10 }
  0xa4   :  { %v82_v13 = vsel %vm65_vm0, %v78_v12, 0.0 }
  0xa5   :  { %83 = vadd.xlane.f32.xlu1 %v82_v13 }
 0x12e   :  { %v81_v17 = vpop.xlane.xlu1 %80 }
 0x12f   :  { %v85_v18 = vmul.f32 0.03125, %v81_v17 }
 0x131   :  { %v87_v19 = vadd.f32 1e-12, %v85_v18 }
 0x132   :  { %v84_v20 = vpop.xlane.xlu1 %83 }
 0x133   :  { %3788 = vrsqrt.f32 %v87_v19  ;;  %v86_v21 = vmul.f32 0.03125, %v84_v20 }
 0x135   :  { %v88_v22 = vadd.f32 1e-12, %v86_v21 }
 0x137   :  { %3790 = vrsqrt.f32 %v88_v22  ;;  %v3217_v22 = vld [vmem:[%s4784_s20] ss:$0 sm:$0xff] }
 0x13d   :  { %v3789_v23 = vpop.eup %3788 }
 0x13e   :  { %v91_v24 = vmul.f32 %v3789_v23, %v75_v6 }
 0x140   :  { %v99_v28 = vmul.f32 %v3203_v25, %v91_v24 }
 0x141   :  { %v3791_v26 = vpop.eup %3790 }
 0x142   :  { %v92_v27 = vmul.f32 %v3791_v26, %v76_v10  ;;  %v4047_v31 = vadd.f32 %v3204_v29, %v99_v28 }
 0x144   :  { %v100_v30 = vmul.f32 %v3203_v25, %v92_v27 }
 0x146   :  { %v4049_v32 = vadd.f32 %v3204_v29, %v100_v30 }
 0x148   :  { %v121_v33 = vpack.c.bf16 %v4049_v32, %v4047_v31 }
 0x14a   :  { %3433 = vmatmul.mubr.msk.bf16.vlgmr.msra.gmra.mrb[0].mxu0 %vm65_vm0, %v121_v33 }
 0x14b   :  { %3444 = vmatprep.mubr.msk.bf16.mxu0 %vm3915_vm1, %v3914_v15 }
 0x21d   :  { %v178_v35 = vpop.f32.mrb[0].mxu0 }
 0x21e   :  { %v3434_v36 = vpop.f32.mrb[1].mxu0  ;;  %v179_v38 = vadd.f32 %v3205_v34, %v178_v35  ;;  %v3220_v35 = vld [vmem:[%s4784_s20 + $0x3] ss:$0 sm:$0xff] }
 0x21f   :  { %v181_v37 = vpop.f32.mrb[2].mxu0 }
 0x220   :  { %v182_v39 = vadd.f32 %v3205_v34, %v181_v37  ;;  %v3435_v40 = vpop.f32.mrb[3].mxu0  ;;  %v205_v43 = vpack.c.bf16 %v179_v38, %v179_v38  ;;  %v3219_v34 = vld [vmem:[%s4784_s20 + $0x2] ss:$0 sm:$0xff] }
 0x222   :  { %v3745_v41 = vpack.i.bf16 %v182_v39, %v179_v38  ;;  %v4061_v42 = vpack.c.bf16 %v182_v39, %v182_v39 }
 0x224   :  { %3746 = vrot.lane.b32.xlu1 %v3745_v41, %s3916_s3  ;;  %3741 = vrot.lane.b32.xlu0 %v3745_v41, %s3917_s28 }
 0x228   :  { %3751 = vrot.lane.b32.xlu1 %v3745_v41, %s3918_s29  ;;  %264 = vrot.lane.b32.xlu0 %v4061_v42, %s3919_s30 }
 0x22c   :  { %214 = vrot.lane.b32.xlu1 %v205_v43, %s3919_s30 }
 0x296   :  { %v3747_v44 = vpop.permute.xlu1 %3746  ;;  %v3742_v45 = vpop.permute.xlu0 %3741 }
 0x297   :  { %v3744_v46 = vunpack.i.h.bf16 %v3742_v45  ;;  %v3743_v47 = vunpack.i.l.bf16 %v3742_v45  ;;  %v3749_v48 = vunpack.i.h.bf16 %v3747_v44  ;;  %v3748_v49 = vunpack.i.l.bf16 %v3747_v44 }
 0x299   :  { %v4067_v50 = vpack.c.bf16 %v3744_v46, %v3744_v46  ;;  %v4069_v51 = vpack.c.bf16 %v3743_v47, %v3743_v47  ;;  %v4076_v55 = vpack.c.bf16 %v3749_v48, %v3749_v48  ;;  %v4078_v56 = vpack.c.bf16 %v3748_v49, %v3748_v49  ;;  %v3221_v48 = vld [vmem:[%s4784_s20 + $0x4] ss:$0 sm:$0xff] }
 0x29a   :  { %v3752_v52 = vpop.permute.xlu1 %3751  ;;  %v265_v53 = vpop.permute.xlu0 %264 }
 0x29b   :  { %v270_v54 = vsel %vm216_vm2, %v265_v53, 0  ;;  %313 = vrot.lane.b32.xlu1 %v4069_v51, %s3919_s30  ;;  %362 = vrot.lane.b32.xlu0 %v4067_v50, %s3919_s30  ;;  %v3754_v57 = vunpack.i.h.bf16 %v3752_v52  ;;  %v3753_v58 = vunpack.i.l.bf16 %v3752_v52 }
 0x29c   :  { %3443 = vmatpush3.bf16.xpose.msra.mxu0 %v270_v54  ;;  %v3222_v54 = vld [vmem:[%s4784_s20 + $0x5] ss:$0 sm:$0xff] }
 0x29d   :  { %3454 = vmatprep.subr.bf16.mxu0 %v3914_v15  ;;  %v4086_v61 = vpack.c.bf16 %v3754_v57, %v3754_v57  ;;  %v4088_v62 = vpack.c.bf16 %v3753_v58, %v3753_v58 }
 0x29e   :  { %v215_v59 = vpop.permute.xlu1 %214 }
 0x29f   :  { %411 = vrot.lane.b32.xlu1 %v4078_v56, %s3919_s30  ;;  %460 = vrot.lane.b32.xlu0 %v4076_v55, %s3919_s30  ;;  %v221_v60 = vsel %vm216_vm2, %v215_v59, 0 }
 0x2a0   :  { %3437 = vmatpush3.bf16.xpose.msra.mxu1 %v221_v60 }
 0x2a1   :  { %3448 = vmatprep.subr.bf16.mxu1 %v3914_v15 }
 0x2a3   :  { %509 = vrot.lane.b32.xlu1 %v4088_v62, %s3919_s30  ;;  %558 = vrot.lane.b32.xlu0 %v4086_v61, %s3919_s30 }
 0x2a4   :  { %3445 = vmatmul.mubr.msk.bf16.vlgmr.msra.gmra.mrb[4].mxu0 %vm216_vm2, %v4061_v42 }
 0x2a5   :  { %3456 = vmatprep.mubr.msk.bf16.mxu0 %vm3915_vm1, %v3914_v15 }
 0x2a7   :  { %3439 = vmatmul.mubr.msk.bf16.vlgmr.msra.gmra.mrb[0].mxu1 %vm216_vm2, %v205_v43  ;;  %766 = vrot.lane.b32.xlu1 %v205_v43, %s3920_s0 }
 0x2a8   :  { %3450 = vmatprep.mubr.msk.bf16.mxu1 %vm3915_vm1, %v3914_v15 }
 0x30d   :  { %v314_v63 = vpop.permute.xlu1 %313  ;;  %v363_v0 = vpop.permute.xlu0 %362 }
 0x30e   :  { %v319_v1 = vsel %vm216_vm2, %v314_v63, 0  ;;  %v368_v2 = vsel %vm216_vm2, %v363_v0, 0 }
 0x30f   :  { %3449 = vmatpush3.bf16.xpose.msra.mxu1 %v319_v1  ;;  %3455 = vmatpush3.bf16.xpose.msra.mxu0 %v368_v2 }
 0x310   :  { %3460 = vmatprep.subr.bf16.mxu1 %v3914_v15  ;;  %3466 = vmatprep.subr.bf16.mxu0 %v3914_v15 }
 0x311   :  { %v412_v3 = vpop.permute.xlu1 %411  ;;  %v461_v4 = vpop.permute.xlu0 %460 }
 0x312   :  { %v417_v5 = vsel %vm216_vm2, %v412_v3, 0  ;;  %v466_v6 = vsel %vm216_vm2, %v461_v4, 0 }
 0x315   :  { %v510_v7 = vpop.permute.xlu1 %509  ;;  %v559_v8 = vpop.permute.xlu0 %558 }
 0x316   :  { %3451 = vmatmul.mubr.msk.bf16.vlgmr.msra.gmra.mrb[4].mxu1 %vm216_vm2, %v4069_v51  ;;  %3457 = vmatmul.mubr.msk.bf16.vlgmr.msra.gmra.mrb[8].mxu0 %vm216_vm2, %v4067_v50  ;;  %v515_v9 = vsel %vm216_vm2, %v510_v7, 0  ;;  %v564_v10 = vsel %vm216_vm2, %v559_v8, 0 }
 0x317   :  { %3461 = vmatpush3.bf16.xpose.msra.mxu1 %v417_v5  ;;  %3467 = vmatpush3.bf16.xpose.msra.mxu0 %v466_v6 }
 0x318   :  { %3462 = vmatprep.mubr.msk.bf16.mxu1 %vm3915_vm1, %v3914_v15  ;;  %3468 = vmatprep.mubr.msk.bf16.mxu0 %vm3915_vm1, %v3914_v15 }
 0x319   :  { %3472 = vmatprep.subr.bf16.mxu1 %v3914_v15  ;;  %3478 = vmatprep.subr.bf16.mxu0 %v3914_v15  ;;  %v767_v11 = vpop.permute.xlu1 %766 }
 0x31a   :  { %v773_v12 = vsel %vm771_vm3, %v767_v11, 0 }
 0x31e   :  { %3463 = vmatmul.mubr.msk.bf16.vlgmr.msra.gmra.mrb[8].mxu1 %vm216_vm2, %v4078_v56  ;;  %3469 = vmatmul.mubr.msk.bf16.vlgmr.msra.gmra.mrb[12].mxu0 %vm216_vm2, %v4076_v55 }
 0x31f   :  { %3473 = vmatpush3.bf16.xpose.msra.mxu1 %v515_v9  ;;  %3479 = vmatpush3.bf16.xpose.msra.mxu0 %v564_v10  ;;  %v3223_v9 = vld [vmem:[%s4784_s20 + $0x6] ss:$0 sm:$0xff]  ;;  %v3224_v10 = vld [vmem:[%s4784_s20 + $0x7] ss:$0 sm:$0xff] }
 0x320   :  { %3474 = vmatprep.mubr.msk.bf16.mxu1 %vm3915_vm1, %v3914_v15  ;;  %3480 = vmatprep.mubr.msk.bf16.mxu0 %vm3915_vm1, %v3914_v15 }
 0x321   :  { %3484 = vmatprep.subr.bf16.mxu1 %v3914_v15  ;;  %3490 = vmatprep.subr.bf16.mxu0 %v3914_v15 }
 0x326   :  { %3475 = vmatmul.mubr.msk.bf16.vlgmr.msra.gmra.mrb[12].mxu1 %vm216_vm2, %v4088_v62  ;;  %3481 = vmatmul.mubr.msk.bf16.vlgmr.msra.gmra.mrb[16].mxu0 %vm216_vm2, %v4086_v61 }
 0x327   :  { %3485 = vmatpush3.bf16.msra.mxu1 %v773_v12  ;;  %3492 = vmatprep.mubr.msk.bf16.mxu0 %vm3915_vm1, %v3914_v15 }
 0x328   :  { %3486 = vmatprep.mubr.msk.bf16.mxu1 %vm3915_vm1, %v3914_v15  ;;  %3496 = vmatprep.subr.bf16.mxu1 %v3914_v15 }
 0x377   :  { %v306_v13 = vpop.f32.mrb[4].mxu0 }
 0x378   :  { %v607_v16 = vmul.f32 0.35355338, %v306_v13  ;;  %v3446_v17 = vpop.f32.mrb[5].mxu0 }
 0x379   :  { %v309_v18 = vpop.f32.mrb[6].mxu0 }
 0x37a   :  { %v3447_v19 = vpop.f32.mrb[7].mxu0  ;;  %v257_v20 = vpop.f32.mrb[0].mxu1  ;;  %v4144_v21 = vadd.f32 %v3218_v14, %v607_v16 }
 0x37b   :  { %v606_v23 = vmul.f32 0.35355338, %v257_v20  ;;  %v3440_v24 = vpop.f32.mrb[1].mxu1 }
 0x37c   :  { %v260_v25 = vpop.f32.mrb[2].mxu1  ;;  %v673_v26 = vsel %vm216_vm2, %v4144_v21, -inf }
 0x37d   :  { %674 = vmax.xlane.f32.xlu0 %v673_v26  ;;  %v3441_v27 = vpop.f32.mrb[3].mxu1  ;;  %v4151_v28 = vadd.f32 %v3217_v22, %v606_v23 }
 0x37f   :  { %v670_v29 = vsel %vm216_vm2, %v4151_v28, -inf }
 0x380   :  { %671 = vmax.xlane.f32.xlu1 %v670_v29 }
 0x3e9   :  { %v355_v30 = vpop.f32.mrb[4].mxu1  ;;  %v404_v33 = vpop.f32.mrb[8].mxu0 }
 0x3ea   :  { %v608_v36 = vmul.f32 0.35355338, %v355_v30  ;;  %v609_v37 = vmul.f32 0.35355338, %v404_v33  ;;  %v3452_v38 = vpop.f32.mrb[5].mxu1  ;;  %v3458_v39 = vpop.f32.mrb[9].mxu0 }
 0x3eb   :  { %v358_v40 = vpop.f32.mrb[6].mxu1  ;;  %v407_v41 = vpop.f32.mrb[10].mxu0 }
 0x3ec   :  { %v3453_v43 = vpop.f32.mrb[7].mxu1  ;;  %v3459_v44 = vpop.f32.mrb[11].mxu0  ;;  %v664_v45 = vadd.f32 %v3219_v34, %v608_v36  ;;  %v4161_v46 = vadd.f32 %v3220_v35, %v609_v37 }
 0x3ee   :  { %v676_v47 = vsel %vm216_vm2, %v664_v45, -inf  ;;  %v679_v53 = vsel %vm216_vm2, %v4161_v46, -inf }
 0x3ef   :  { %677 = vmax.xlane.f32.xlu0 %v676_v47 }
 0x3f1   :  { %v453_v49 = vpop.f32.mrb[8].mxu1  ;;  %v502_v52 = vpop.f32.mrb[12].mxu0 }
 0x3f2   :  { %v610_v57 = vmul.f32 0.35355338, %v453_v49  ;;  %v611_v58 = vmul.f32 0.35355338, %v502_v52  ;;  %v3464_v59 = vpop.f32.mrb[9].mxu1  ;;  %v3470_v60 = vpop.f32.mrb[13].mxu0 }
 0x3f3   :  { %v456_v63 = vpop.f32.mrb[10].mxu1  ;;  %680 = vmax.xlane.f32.xlu0 %v679_v53  ;;  %v505_v0 = vpop.f32.mrb[14].mxu0 }
 0x3f4   :  { %v3465_v1 = vpop.f32.mrb[11].mxu1  ;;  %v3471_v2 = vpop.f32.mrb[15].mxu0  ;;  %v666_v3 = vadd.f32 %v3221_v48, %v610_v57  ;;  %v4172_v4 = vadd.f32 %v3222_v54, %v611_v58 }
 0x3f6   :  { %v682_v5 = vsel %vm216_vm2, %v666_v3, -inf  ;;  %v685_v6 = vsel %vm216_vm2, %v4172_v4, -inf }
 0x3f7   :  { %683 = vmax.xlane.f32.xlu1 %v682_v5  ;;  %686 = vmax.xlane.f32.xlu0 %v685_v6 }
 0x3f9   :  { %v551_v7 = vpop.f32.mrb[12].mxu1  ;;  %v600_v8 = vpop.f32.mrb[16].mxu0 }
 0x3fa   :  { %v612_v11 = vmul.f32 0.35355338, %v551_v7  ;;  %v613_v12 = vmul.f32 0.35355338, %v600_v8  ;;  %v3476_v13 = vpop.f32.mrb[13].mxu1  ;;  %v3482_v14 = vpop.f32.mrb[17].mxu0 }
 0x3fb   :  { %v554_v16 = vpop.f32.mrb[14].mxu1  ;;  %v603_v17 = vpop.f32.mrb[18].mxu0 }
 0x3fc   :  { %v3477_v18 = vpop.f32.mrb[15].mxu1  ;;  %v3483_v19 = vpop.f32.mrb[19].mxu0  ;;  %v668_v20 = vadd.f32 %v3223_v9, %v612_v11  ;;  %v4183_v22 = vadd.f32 %v3224_v10, %v613_v12 }
 0x3fe   :  { %v688_v23 = vsel %vm216_vm2, %v668_v20, -inf  ;;  %v691_v24 = vsel %vm216_vm2, %v4183_v22, -inf }
 0x3ff   :  { %689 = vmax.xlane.f32.xlu1 %v688_v23  ;;  %692 = vmax.xlane.f32.xlu0 %v691_v24 }
 0x40a   :  { %v675_v25 = vpop.xlane.xlu0 %674 }
 0x40b   :  { %v695_v26 = vsub.f32 %v4144_v21, %v675_v25 }
 0x40d   :  { %v672_v27 = vpop.xlane.xlu1 %671  ;;  %v704_v29 = vmul.f32 1.442695, %v695_v26 }
 0x40e   :  { %v694_v30 = vsub.f32 %v4151_v28, %v672_v27 }
 0x40f   :  { %3792 = vpow2.f32 %v704_v29 }
 0x410   :  { %863 = vrot.lane.b32.xlu1 %v4069_v51, %s3920_s0  ;;  %v702_v33 = vmul.f32 1.442695, %v694_v30 }
 0x412   :  { %3794 = vpow2.f32 %v702_v33 }
 0x414   :  { %911 = vrot.lane.b32.xlu1 %v4067_v50, %s3920_s0 }
 0x415   :  { %815 = vrot.lane.b32.xlu0 %v4061_v42, %s3920_s0 }
 0x419   :  { %v3793_v34 = vpop.eup %3792 }
 0x41a   :  { %v721_v35 = vsel %vm216_vm2, %v3793_v34, 0.0 }
 0x41c   :  { %v4197_v51 = vpop.eup %3794 }
 0x41d   :  { %v718_v50 = vsel %vm216_vm2, %v4197_v51, 0.0 }
 0x434   :  { %722 = vadd.xlane.f32.xlu0 %v721_v35 }
 0x438   :  { %719 = vadd.xlane.f32.xlu1 %v718_v50 }
 0x449   :  { %959 = vrot.lane.b32.xlu1 %v4078_v56, %s3920_s0 }
 0x47c   :  { %v678_v42 = vpop.xlane.xlu0 %677 }
 0x47d   :  { %v696_v21 = vsub.f32 %v664_v45, %v678_v42 }
 0x47f   :  { %v706_v36 = vmul.f32 1.442695, %v696_v21 }
 0x480   :  { %v681_v28 = vpop.xlane.xlu0 %680 }
 0x481   :  { %3796 = vpow2.f32 %v706_v36  ;;  %v697_v37 = vsub.f32 %v4161_v46, %v681_v28  ;;  %v1155_v28 = vld [vmem:[%s4764_s6] sm:$0xf] }
 0x483   :  { %v708_v38 = vmul.f32 1.442695, %v697_v37 }
 0x484   :  { %v684_v39 = vpop.xlane.xlu1 %683  ;;  %v687_v43 = vpop.xlane.xlu0 %686 }
 0x485   :  { %3798 = vpow2.f32 %v708_v38  ;;  %v698_v40 = vsub.f32 %v666_v3, %v684_v39  ;;  %v699_v63 = vsub.f32 %v4172_v4, %v687_v43  ;;  %v1163_v39 = vsel %vm771_vm3, %v1155_v28, 0 }
 0x487   :  { %v710_v41 = vmul.f32 1.442695, %v698_v40  ;;  %v712_v0 = vmul.f32 1.442695, %v699_v63 }
 0x489   :  { %3800 = vpow2.f32 %v710_v41 }
 0x48b   :  { %v4204_v44 = vpop.eup %3796 }
 0x48c   :  { %v690_v47 = vpop.xlane.xlu1 %689  ;;  %v693_v48 = vpop.xlane.xlu0 %692  ;;  %v724_v56 = vsel %vm216_vm2, %v4204_v44, 0.0 }
 0x48d   :  { %v700_v45 = vsub.f32 %v668_v20, %v690_v47  ;;  %725 = vadd.xlane.f32.xlu1 %v724_v56  ;;  %v701_v1 = vsub.f32 %v4183_v22, %v693_v48 }
 0x48f   :  { %v4208_v49 = vpop.eup %3798  ;;  %v714_v52 = vmul.f32 1.442695, %v700_v45  ;;  %v716_v2 = vmul.f32 1.442695, %v701_v1 }
 0x490   :  { %v816_v46 = vpop.permute.xlu0 %815  ;;  %v727_v53 = vsel %vm216_vm2, %v4208_v49, 0.0  ;;  %v864_v3 = vpop.permute.xlu1 %863 }
 0x491   :  { %3802 = vpow2.f32 %v714_v52  ;;  %v821_v54 = vsel %vm771_vm3, %v816_v46, 0  ;;  %728 = vadd.xlane.f32.xlu0 %v727_v53  ;;  %v869_v17 = vsel %vm771_vm3, %v864_v3, 0  ;;  %v1156_v46 = vld [vmem:[%s4764_s6 + $0x4] sm:$0xf]  ;;  %v1157_v3 = vld [vmem:[%s4764_s6 + $0x8] sm:$0xf] }
 0x492   :  { %3491 = vmatpush3.bf16.msra.mxu0 %v821_v54  ;;  %3804 = vpow2.f32 %v712_v0  ;;  %v1210_v53 = vsel %vm771_vm3, %v1156_v46, 0 }
 0x493   :  { %v4213_v57 = vpop.eup %3800  ;;  %3502 = vmatprep.subr.bf16.mxu0 %v3914_v15  ;;  %3806 = vpow2.f32 %v716_v2 }
 0x494   :  { %v730_v58 = vsel %vm216_vm2, %v4213_v57, 0.0  ;;  %v912_v5 = vpop.permute.xlu1 %911 }
 0x495   :  { %731 = vadd.xlane.f32.xlu1 %v730_v58  ;;  %v917_v13 = vsel %vm771_vm3, %v912_v5, 0  ;;  %v1257_v5 = vsel %vm771_vm3, %v1157_v3, 0 }
 0x49b   :  { %v4218_v59 = vpop.eup %3802 }
 0x49c   :  { %v736_v60 = vsel %vm216_vm2, %v4218_v59, 0.0  ;;  %v4228_v7 = vpop.eup %3804 }
 0x49d   :  { %737 = vadd.xlane.f32.xlu1 %v736_v60  ;;  %v4232_v9 = vpop.eup %3806 }
 0x4a7   :  { %1007 = vrot.lane.b32.xlu0 %v4076_v55, %s3920_s0  ;;  %v733_v55 = vsel %vm216_vm2, %v4228_v7, 0.0 }
 0x4ae   :  { %1055 = vrot.lane.b32.xlu1 %v4088_v62, %s3920_s0  ;;  %v739_v62 = vsel %vm216_vm2, %v4232_v9, 0.0 }
 0x4c1   :  { %v723_v6 = vpop.xlane.xlu0 %722 }
 0x4c2   :  { %3808 = vrcp.f32 %v723_v6 }
 0x4c5   :  { %v720_v8 = vpop.xlane.xlu1 %719 }
 0x4c6   :  { %3810 = vrcp.f32 %v720_v8  ;;  %734 = vadd.xlane.f32.xlu0 %v733_v55  ;;  %v1158_v55 = vld [vmem:[%s4764_s6 + $0xc] sm:$0xf] }
 0x4c9   :  { %v960_v18 = vpop.permute.xlu1 %959 }
 0x4ca   :  { %740 = vadd.xlane.f32.xlu0 %v739_v62  ;;  %v965_v27 = vsel %vm771_vm3, %v960_v18, 0 }
 0x4cc   :  { %v3809_v4 = vpop.eup %3808 }
 0x4cd   :  { %v751_v10 = vmul.f32 %v3809_v4, %v3793_v34 }
 0x4cf   :  { %v759_v11 = vpack.c.bf16 %v751_v10, %v751_v10 }
 0x4d0   :  { %v3811_v12 = vpop.eup %3810 }
 0x4d1   :  { %v750_v14 = vmul.f32 %v3811_v12, %v4197_v51  ;;  %3493 = vmatmul.mubr.msk.bf16.vlgmr.msra.gmra.mrb[20].mxu0 %vm216_vm2, %v759_v11  ;;  %v1304_v11 = vsel %vm771_vm3, %v1158_v55, 0 }
 0x4d2   :  { %3503 = vmatpush3.bf16.msra.mxu0 %v917_v13  ;;  %3504 = vmatprep.mubr.msk.bf16.mxu0 %vm3915_vm1, %v3914_v15 }
 0x4d3   :  { %v758_v16 = vpack.c.bf16 %v750_v14, %v750_v14  ;;  %3514 = vmatprep.subr.bf16.mxu0 %v3914_v15 }
 0x4d5   :  { %3487 = vmatmul.mubr.msk.bf16.vlgmr.msra.gmra.mrb[16].mxu1 %vm216_vm2, %v758_v16 }
 0x4d6   :  { %3497 = vmatpush3.bf16.msra.mxu1 %v869_v17  ;;  %3498 = vmatprep.mubr.msk.bf16.mxu1 %vm3915_vm1, %v3914_v15 }
 0x4d7   :  { %3508 = vmatprep.subr.bf16.mxu1 %v3914_v15 }
 0x4e0   :  { %1103 = vrot.lane.b32.xlu0 %v4086_v61, %s3920_s0 }
 0x51a   :  { %v726_v19 = vpop.xlane.xlu1 %725 }
 0x51b   :  { %3812 = vrcp.f32 %v726_v19 }
 0x51e   :  { %v729_v20 = vpop.xlane.xlu0 %728 }
 0x51f   :  { %3814 = vrcp.f32 %v729_v20 }
 0x522   :  { %v732_v22 = vpop.xlane.xlu1 %731  ;;  %v1008_v61 = vpop.permute.xlu0 %1007 }
 0x523   :  { %3816 = vrcp.f32 %v732_v22  ;;  %v1013_v51 = vsel %vm771_vm3, %v1008_v61, 0 }
 0x525   :  { %v3813_v23 = vpop.eup %3812 }
 0x526   :  { %v752_v24 = vmul.f32 %v3813_v23, %v4204_v44 }
 0x528   :  { %v760_v25 = vpack.c.bf16 %v752_v24, %v752_v24 }
 0x529   :  { %v3815_v26 = vpop.eup %3814 }
 0x52a   :  { %v753_v29 = vmul.f32 %v3815_v26, %v4208_v49  ;;  %3499 = vmatmul.mubr.msk.bf16.vlgmr.msra.gmra.mrb[20].mxu1 %vm216_vm2, %v760_v25  ;;  %v738_v30 = vpop.xlane.xlu1 %737 }
 0x52b   :  { %3509 = vmatpush3.bf16.msra.mxu1 %v965_v27  ;;  %3818 = vrcp.f32 %v738_v30  ;;  %3510 = vmatprep.mubr.msk.bf16.mxu1 %vm3915_vm1, %v3914_v15 }
 0x52c   :  { %v761_v33 = vpack.c.bf16 %v753_v29, %v753_v29  ;;  %3520 = vmatprep.subr.bf16.mxu1 %v3914_v15 }
 0x52d   :  { %v3817_v34 = vpop.eup %3816 }
 0x52e   :  { %v754_v35 = vmul.f32 %v3817_v34, %v4213_v57  ;;  %3505 = vmatmul.mubr.msk.bf16.vlgmr.msra.gmra.mrb[24].mxu0 %vm216_vm2, %v761_v33  ;;  %v1056_v50 = vpop.permute.xlu1 %1055 }
 0x52f   :  { %3515 = vmatpush3.bf16.msra.mxu0 %v1013_v51  ;;  %3516 = vmatprep.mubr.msk.bf16.mxu0 %vm3915_vm1, %v3914_v15  ;;  %v1061_v21 = vsel %vm771_vm3, %v1056_v50, 0 }
 0x530   :  { %v762_v42 = vpack.c.bf16 %v754_v35, %v754_v35  ;;  %3526 = vmatprep.subr.bf16.mxu0 %v3914_v15 }
 0x532   :  { %3511 = vmatmul.mubr.msk.bf16.vlgmr.msra.gmra.mrb[24].mxu1 %vm216_vm2, %v762_v42 }
 0x533   :  { %3521 = vmatpush3.bf16.msra.mxu1 %v1061_v21  ;;  %3522 = vmatprep.mubr.msk.bf16.mxu1 %vm3915_vm1, %v3914_v15 }
 0x534   :  { %3532 = vmatprep.subr.bf16.mxu1 %v3914_v15 }
 0x535   :  { %v3819_v36 = vpop.eup %3818 }
 0x536   :  { %v756_v37 = vmul.f32 %v3819_v36, %v4218_v59 }
 0x538   :  { %v764_v38 = vpack.c.bf16 %v756_v37, %v756_v37 }
 0x53a   :  { %3523 = vmatmul.mubr.msk.bf16.vlgmr.msra.gmra.mrb[28].mxu1 %vm216_vm2, %v764_v38 }
 0x53b   :  { %3533 = vmatpush3.bf16.msra.mxu1 %v1163_v39  ;;  %3534 = vmatprep.mubr.msk.bf16.mxu1 %vm3915_vm1, %v3914_v15 }
 0x53c   :  { %3544 = vmatprep.subr.bf16.mxu1 %v3914_v15 }
 0x553   :  { %v735_v40 = vpop.xlane.xlu0 %734 }
 0x554   :  { %3820 = vrcp.f32 %v735_v40 }
 0x557   :  { %v741_v41 = vpop.xlane.xlu0 %740 }
 0x558   :  { %3822 = vrcp.f32 %v741_v41 }
 0x55b   :  { %v1104_v47 = vpop.permute.xlu0 %1103 }
 0x55c   :  { %v1109_v45 = vsel %vm771_vm3, %v1104_v47, 0 }
 0x55e   :  { %v3821_v43 = vpop.eup %3820 }
 0x55f   :  { %v755_v44 = vmul.f32 %v3821_v43, %v4228_v7 }
 0x561   :  { %v763_v48 = vpack.c.bf16 %v755_v44, %v755_v44 }
 0x562   :  { %v3823_v56 = vpop.eup %3822 }
 0x563   :  { %3517 = vmatmul.mubr.msk.bf16.vlgmr.msra.gmra.mrb[28].mxu0 %vm216_vm2, %v763_v48  ;;  %v757_v49 = vmul.f32 %v3823_v56, %v4232_v9 }
 0x564   :  { %3527 = vmatpush3.bf16.msra.mxu0 %v1109_v45  ;;  %3528 = vmatprep.mubr.msk.bf16.mxu0 %vm3915_vm1, %v3914_v15 }
 0x565   :  { %3538 = vmatprep.subr.bf16.mxu0 %v3914_v15  ;;  %v765_v52 = vpack.c.bf16 %v757_v49, %v757_v49 }
 0x56b   :  { %3529 = vmatmul.mubr.msk.bf16.vlgmr.msra.gmra.mrb[32].mxu0 %vm216_vm2, %v765_v52 }
 0x56c   :  { %3540 = vmatprep.mubr.msk.bf16.mxu0 %vm3915_vm1, %v3914_v15  ;;  %3539 = vmatpush3.bf16.msra.mxu0 %v1210_v53 }
 0x56d   :  { %3550 = vmatprep.subr.bf16.mxu0 %v3914_v15 }
 0x5a4   :  { %v857_v54 = vpop.f32.mrb[20].mxu0 }
 0x5a5   :  { %v3494_v57 = vpop.f32.mrb[21].mxu0 }
 0x5a6   :  { %v860_v58 = vpop.f32.mrb[22].mxu0 }
 0x5a7   :  { %v3495_v59 = vpop.f32.mrb[23].mxu0 }
 0x5a8   :  { %v809_v60 = vpop.f32.mrb[16].mxu1  ;;  %v3237_v59 = vld [vmem:[%s4765_s7] ss:$0 sm:$0xff] }
 0x5a9   :  { %v1151_v63 = vpack.c.bf16 %v857_v54, %v809_v60  ;;  %v3488_v0 = vpop.f32.mrb[17].mxu1 }
 0x5aa   :  { %v812_v1 = vpop.f32.mrb[18].mxu1 }
 0x5ab   :  { %v3489_v2 = vpop.f32.mrb[19].mxu1  ;;  %3535 = vmatmul.mubr.msk.bf16.vlgmr.msra.gmra.mrb[32].mxu1 %vm216_vm2, %v1151_v63 }
 0x5ac   :  { %3546 = vmatprep.mubr.msk.bf16.mxu1 %vm3915_vm1, %v3914_v15  ;;  %3545 = vmatpush3.bf16.msra.mxu1 %v1257_v5 }
 0x5ad   :  { %3556 = vmatprep.subr.bf16.mxu1 %v3914_v15 }
 0x5fd   :  { %v905_v6 = vpop.f32.mrb[20].mxu1 }
 0x5fe   :  { %v3500_v7 = vpop.f32.mrb[21].mxu1 }
 0x5ff   :  { %v908_v8 = vpop.f32.mrb[22].mxu1 }
 0x600   :  { %v3501_v9 = vpop.f32.mrb[23].mxu1 }
 0x601   :  { %v953_v62 = vpop.f32.mrb[24].mxu0 }
 0x602   :  { %v1152_v4 = vpack.c.bf16 %v953_v62, %v905_v6  ;;  %v3506_v10 = vpop.f32.mrb[25].mxu0 }
 0x603   :  { %v956_v12 = vpop.f32.mrb[26].mxu0 }
 0x604   :  { %v3507_v13 = vpop.f32.mrb[27].mxu0  ;;  %3541 = vmatmul.mubr.msk.bf16.vlgmr.msra.gmra.mrb[36].mxu0 %vm216_vm2, %v1152_v4 }
 0x605   :  { %v1001_v14 = vpop.f32.mrb[24].mxu1  ;;  %3551 = vmatpush3.bf16.msra.mxu0 %v1304_v11  ;;  %3552 = vmatprep.mubr.msk.bf16.mxu0 %vm3915_vm1, %v3914_v15 }
 0x606   :  { %v3512_v16 = vpop.f32.mrb[25].mxu1  ;;  %3564 = vmatprep.subr.bf16.mxu0 %v3914_v15 }
 0x607   :  { %v1004_v17 = vpop.f32.mrb[26].mxu1 }
 0x608   :  { %v3513_v18 = vpop.f32.mrb[27].mxu1 }
 0x609   :  { %v3773_v18 = vld [vmem:[%s4768_s10 + $0x8] sm:$0xff]  }
 0x60d   :  { %v1097_v19 = vpop.f32.mrb[28].mxu1 }
 0x60e   :  { %v3524_v20 = vpop.f32.mrb[29].mxu1 }
 0x60f   :  { %v1100_v22 = vpop.f32.mrb[30].mxu1 }
 0x610   :  { %v3525_v23 = vpop.f32.mrb[31].mxu1 }
 0x636   :  { %v1049_v24 = vpop.f32.mrb[28].mxu0 }
 0x637   :  { %v1153_v25 = vpack.c.bf16 %v1049_v24, %v1001_v14  ;;  %v3518_v26 = vpop.f32.mrb[29].mxu0 }
 0x638   :  { %v1052_v27 = vpop.f32.mrb[30].mxu0 }
 0x639   :  { %v3519_v29 = vpop.f32.mrb[31].mxu0  ;;  %3547 = vmatmul.mubr.msk.bf16.vlgmr.msra.gmra.mrb[36].mxu1 %vm216_vm2, %v1153_v25 }
 0x63a   :  { %3560 = vmatprep.mubr.msk.bf16.mxu1 %vm3915_vm1, %v3914_v15  ;;  %v3238_v29 = vld [vmem:[%s4766_s8] ss:$0 sm:$0xff] }
 0x63e   :  { %v1145_v30 = vpop.f32.mrb[32].mxu0 }
 0x63f   :  { %v1154_v61 = vpack.c.bf16 %v1145_v30, %v1097_v19  ;;  %v3530_v33 = vpop.f32.mrb[33].mxu0 }
 0x640   :  { %v1148_v34 = vpop.f32.mrb[34].mxu0 }
 0x641   :  { %v3531_v35 = vpop.f32.mrb[35].mxu0  ;;  %3553 = vmatmul.mubr.msk.bf16.vlgmr.msra.gmra.mrb[40].mxu0 %vm216_vm2, %v1154_v61  ;;  %v3239_v34 = vld [vmem:[%s4767_s9] ss:$0 sm:$0xff] }
 0x642   :  { %3572 = vmatprep.mubr.msk.bf16.mxu0 %vm3915_vm1, %v3914_v15 }
 0x67e   :  { %v1199_v51 = vpop.f32.mrb[32].mxu1 }
 0x67f   :  { %v3536_v50 = vpop.f32.mrb[33].mxu1  ;;  %v1347_v28 = vsel %vm65_vm0, %v1199_v51, 0.0 }
 0x680   :  { %v1202_v42 = vpop.f32.mrb[34].mxu1 }
 0x681   :  { %v3537_v21 = vpop.f32.mrb[35].mxu1  ;;  %v1354_v41 = vsel %vm65_vm0, %v1202_v42, 0.0 }
 0x682   :  { %v3774_v21 = vld [vmem:[%s4770_s12] sm:$0xff]  }
 0x683   :  { %3565 = vmatpush3.bf16.msra.mxu0 %v3774_v21 }
 0x684   :  { %3566 = vmatprep.subr.bf16.mxu0 %v3914_v15 }
 0x6d7   :  { %v1246_v36 = vpop.f32.mrb[36].mxu0 }
 0x6d8   :  { %v1348_v37 = vsel %vm65_vm0, %v1246_v36, 0.0  ;;  %v3542_v38 = vpop.f32.mrb[37].mxu0  ;;  %v3775_v36 = vld [vmem:[%s4770_s12 + $0x8] sm:$0xff]  }
 0x6d9   :  { %v1349_v39 = vadd.f32 %v1348_v37, %v1347_v28  ;;  %v1249_v40 = vpop.f32.mrb[38].mxu0  ;;  %3567 = vmatpush3.bf16.msra.mxu0 %v3775_v36  ;;  %v3776_v28 = vld [vmem:[%s4770_s12 + $0x10] sm:$0xff]   ;;  %v3777_v37 = vld [vmem:[%s4770_s12 + $0x18] sm:$0xff]   ;;  %v3240_v38 = vld [vmem:[%s4769_s11] ss:$0 sm:$0xff] }
 0x6da   :  { %v1355_v43 = vsel %vm65_vm0, %v1249_v40, 0.0  ;;  %v3543_v44 = vpop.f32.mrb[39].mxu0  ;;  %3568 = vmatprep.subr.bf16.mxu0 %v3914_v15 }
 0x6db   :  { %v1356_v47 = vadd.f32 %v1355_v43, %v1354_v41 }
 0x6dd   :  { %3569 = vmatpush3.bf16.msra.mxu0 %v3776_v28  ;;  %v3251_v28 = vld [vmem:[%s4773_s15] ss:$0 sm:$0xff] }
 0x6de   :  { %3570 = vmatprep.subr.bf16.mxu0 %v3914_v15 }
 0x6e1   :  { %3571 = vmatpush3.bf16.msra.mxu0 %v3777_v37 }
 0x6e2   :  { %3590 = vmatprep.subr.bf16.mxu0 %v3914_v15 }
 0x70c   :  { %v1293_v48 = vpop.f32.mrb[36].mxu1 }
 0x70d   :  { %v1350_v56 = vsel %vm65_vm0, %v1293_v48, 0.0  ;;  %v3548_v45 = vpop.f32.mrb[37].mxu1 }
 0x70e   :  { %v1351_v49 = vadd.f32 %v1350_v56, %v1349_v39  ;;  %v1296_v52 = vpop.f32.mrb[38].mxu1 }
 0x70f   :  { %v1357_v46 = vsel %vm65_vm0, %v1296_v52, 0.0  ;;  %v3549_v53 = vpop.f32.mrb[39].mxu1 }
 0x710   :  { %v1358_v54 = vadd.f32 %v1357_v46, %v1356_v47 }
 0x714   :  { %v1340_v57 = vpop.f32.mrb[40].mxu0 }
 0x715   :  { %v1352_v58 = vsel %vm65_vm0, %v1340_v57, 0.0  ;;  %v3554_v60 = vpop.f32.mrb[41].mxu0 }
 0x716   :  { %v1353_v63 = vadd.f32 %v1352_v58, %v1351_v49  ;;  %v1343_v0 = vpop.f32.mrb[42].mxu0 }
 0x717   :  { %v1359_v1 = vsel %vm65_vm0, %v1343_v0, 0.0  ;;  %v3555_v2 = vpop.f32.mrb[43].mxu0 }
 0x718   :  { %v1368_v3 = vadd.f32 %v3237_v59, %v1353_v63  ;;  %v1360_v5 = vadd.f32 %v1359_v1, %v1358_v54 }
 0x71a   :  { %v1369_v6 = vadd.f32 %v3237_v59, %v1360_v5  ;;  %v1370_v7 = vadd.f32 %v1368_v3, %v4047_v31 }
 0x71c   :  { %v1374_v8 = vsel %vm65_vm0, %v1370_v7, 0.0  ;;  %v1371_v55 = vadd.f32 %v1369_v6, %v4049_v32  ;;  %v3772_v32 = vld [vmem:[%s4768_s10] sm:$0xff]  }
 0x71d   :  { %1375 = vadd.xlane.f32.xlu1 %v1374_v8  ;;  %3557 = vmatpush3.bf16.msra.mxu1 %v3772_v32 }
 0x71e   :  { %v1377_v9 = vsel %vm65_vm0, %v1371_v55, 0.0  ;;  %3558 = vmatprep.subr.bf16.mxu1 %v3914_v15 }
 0x71f   :  { %1378 = vadd.xlane.f32.xlu0 %v1377_v9 }
 0x721   :  { %3559 = vmatpush3.bf16.msra.mxu1 %v3773_v18 }
 0x722   :  { %3576 = vmatprep.subr.bf16.mxu1 %v3914_v15 }
 0x7aa   :  { %v1376_v62 = vpop.xlane.xlu1 %1375 }
 0x7ab   :  { %v1380_v4 = vmul.f32 0.03125, %v1376_v62 }
 0x7ac   :  { %v1379_v10 = vpop.xlane.xlu0 %1378 }
 0x7ad   :  { %v1382_v11 = vsub.f32 %v1370_v7, %v1380_v4  ;;  %v1381_v12 = vmul.f32 0.03125, %v1379_v10  ;;  %v3244_v7 = vld [vmem:[%s4771_s13] ss:$0 sm:$0xff] }
 0x7af   :  { %v1383_v13 = vsub.f32 %v1371_v55, %v1381_v12  ;;  %v1384_v14 = vmul.f32 %v1382_v11, %v1382_v11 }
 0x7b1   :  { %v1386_v16 = vsel %vm65_vm0, %v1384_v14, 0.0  ;;  %v1385_v17 = vmul.f32 %v1383_v13, %v1383_v13 }
 0x7b2   :  { %1387 = vadd.xlane.f32.xlu0 %v1386_v16 }
 0x7b3   :  { %v1389_v31 = vsel %vm65_vm0, %v1385_v17, 0.0 }
 0x7b6   :  { %1390 = vadd.xlane.f32.xlu0 %v1389_v31 }
 0x83f   :  { %v1388_v19 = vpop.xlane.xlu0 %1387 }
 0x840   :  { %v1392_v20 = vmul.f32 0.03125, %v1388_v19 }
 0x842   :  { %v1394_v22 = vadd.f32 1e-12, %v1392_v20 }
 0x843   :  { %v1391_v23 = vpop.xlane.xlu0 %1390 }
 0x844   :  { %3824 = vrsqrt.f32 %v1394_v22  ;;  %v1393_v24 = vmul.f32 0.03125, %v1391_v23 }
 0x846   :  { %v1395_v25 = vadd.f32 1e-12, %v1393_v24 }
 0x848   :  { %3826 = vrsqrt.f32 %v1395_v25  ;;  %v3778_v25 = vld [vmem:[%s4762_s4 + $0x10] sm:$0xff]  }
 0x84e   :  { %v3825_v26 = vpop.eup %3824 }
 0x84f   :  { %v1398_v27 = vmul.f32 %v3825_v26, %v1382_v11  ;;  %v3779_v26 = vld [vmem:[%s4762_s4 + $0x18] sm:$0xff]  }
 0x851   :  { %v1406_v61 = vmul.f32 %v3238_v29, %v1398_v27 }
 0x852   :  { %v3827_v30 = vpop.eup %3826 }
 0x853   :  { %v1399_v33 = vmul.f32 %v3827_v30, %v1383_v13  ;;  %v1414_v51 = vadd.f32 %v3239_v34, %v1406_v61 }
 0x855   :  { %v1407_v35 = vmul.f32 %v3238_v29, %v1399_v33 }
 0x857   :  { %v1415_v50 = vadd.f32 %v3239_v34, %v1407_v35 }
 0x859   :  { %v1420_v42 = vpack.c.bf16 %v1415_v50, %v1414_v51 }
 0x85b   :  { %3561 = vmatmul.mubr.msk.bf16.vlgmr.msra.gmra.mrb[40].mxu1 %vm65_vm0, %v1420_v42 }
 0x85c   :  { %3580 = vmatprep.mubr.msk.bf16.mxu1 %vm3915_vm1, %v3914_v15  ;;  %3577 = vmatpush3.bf16.msra.mxu1 %v3778_v25 }
 0x85d   :  { %3578 = vmatprep.subr.bf16.mxu1 %v3914_v15 }
 0x860   :  { %3579 = vmatpush3.bf16.msra.mxu1 %v3779_v26 }
 0x861   :  { %3584 = vmatprep.subr.bf16.mxu1 %v3914_v15 }
 0x92e   :  { %v1477_v39 = vpop.f32.mrb[40].mxu1 }
 0x92f   :  { %v1478_v40 = vadd.f32 %v3240_v38, %v1477_v39  ;;  %v3562_v41 = vpop.f32.mrb[41].mxu1 }
 0x930   :  { %v1480_v43 = vpop.f32.mrb[42].mxu1  ;;  %v3257_v41 = vld [vmem:[%s4763_s5 + $0x1] ss:$0 sm:$0xff] }
 0x931   :  { %v1486_v44 = vmul.f32 0.044715, %v1478_v40  ;;  %v1481_v47 = vadd.f32 %v3240_v38, %v1480_v43  ;;  %v3563_v48 = vpop.f32.mrb[43].mxu1  ;;  %v1484_v0 = vmul.f32 0.5, %v1478_v40 }
 0x933   :  { %v1488_v56 = vmul.f32 %v1486_v44, %v1478_v40  ;;  %v1487_v45 = vmul.f32 0.044715, %v1481_v47  ;;  %v1485_v1 = vmul.f32 0.5, %v1481_v47 }
 0x935   :  { %v1490_v49 = vmul.f32 %v1488_v56, %v1478_v40  ;;  %v1489_v52 = vmul.f32 %v1487_v45, %v1481_v47 }
 0x937   :  { %v1492_v46 = vadd.f32 %v1490_v49, %v1478_v40  ;;  %v1491_v53 = vmul.f32 %v1489_v52, %v1481_v47 }
 0x939   :  { %v1494_v54 = vmul.f32 0.7978846, %v1492_v46  ;;  %v1493_v57 = vadd.f32 %v1491_v53, %v1481_v47 }
 0x93b   :  { %3828 = vtanh.f32 %v1494_v54  ;;  %v1495_v58 = vmul.f32 0.7978846, %v1493_v57 }
 0x93d   :  { %3830 = vtanh.f32 %v1495_v58 }
 0x945   :  { %v3829_v59 = vpop.eup %3828 }
 0x946   :  { %v1498_v60 = vadd.f32 1.0, %v3829_v59 }
 0x947   :  { %v3831_v63 = vpop.eup %3830 }
 0x948   :  { %v1499_v2 = vadd.f32 1.0, %v3831_v63  ;;  %v1500_v3 = vmul.f32 %v1498_v60, %v1484_v0 }
 0x94a   :  { %v1501_v5 = vmul.f32 %v1499_v2, %v1485_v1 }
 0x94c   :  { %v1510_v6 = vpack.c.bf16 %v1501_v5, %v1500_v3 }
 0x94e   :  { %3573 = vmatmul.mubr.msk.bf16.vlgmr.msra.gmra.mrb[44].mxu0 %vm1542_vm4, %v1510_v6 }
 0x94f   :  { %3592 = vmatprep.mubr.msk.bf16.mxu0 %vm3915_vm1, %v3914_v15 }
 0xa21   :  { %v1580_v8 = vpop.f32.mrb[44].mxu0 }
 0xa22   :  { %v1581_v55 = vadd.f32 %v3244_v7, %v1580_v8  ;;  %v3574_v9 = vpop.f32.mrb[45].mxu0 }
 0xa23   :  { %v1583_v62 = vpop.f32.mrb[46].mxu0 }
 0xa24   :  { %v1584_v4 = vadd.f32 %v3244_v7, %v1583_v62  ;;  %v3575_v10 = vpop.f32.mrb[47].mxu0  ;;  %v1587_v11 = vadd.f32 %v1581_v55, %v1414_v51  ;;  %v3250_v51 = vld [vmem:[%s4772_s14] ss:$0 sm:$0xff] }
 0xa26   :  { %v1591_v12 = vsel %vm65_vm0, %v1587_v11, 0.0  ;;  %v1588_v13 = vadd.f32 %v1584_v4, %v1415_v50 }
 0xa27   :  { %1592 = vadd.xlane.f32.xlu1 %v1591_v12 }
 0xa28   :  { %v1594_v14 = vsel %vm65_vm0, %v1588_v13, 0.0 }
 0xa29   :  { %1595 = vadd.xlane.f32.xlu0 %v1594_v14 }
 0xab4   :  { %v1593_v16 = vpop.xlane.xlu1 %1592 }
 0xab5   :  { %v1597_v17 = vmul.f32 0.03125, %v1593_v16 }
 0xab6   :  { %v1596_v31 = vpop.xlane.xlu0 %1595 }
 0xab7   :  { %v1599_v32 = vsub.f32 %v1587_v11, %v1597_v17  ;;  %v1598_v18 = vmul.f32 0.03125, %v1596_v31 }
 0xab9   :  { %v1600_v19 = vsub.f32 %v1588_v13, %v1598_v18  ;;  %v1601_v20 = vmul.f32 %v1599_v32, %v1599_v32 }
 0xabb   :  { %v1603_v22 = vsel %vm65_vm0, %v1601_v20, 0.0  ;;  %v1602_v23 = vmul.f32 %v1600_v19, %v1600_v19 }
 0xabc   :  { %1604 = vadd.xlane.f32.xlu1 %v1603_v22 }
 0xabd   :  { %v1606_v24 = vsel %vm65_vm0, %v1602_v23, 0.0 }
 0xabe   :  { %1607 = vadd.xlane.f32.xlu0 %v1606_v24 }
 0xb49   :  { %v1605_v27 = vpop.xlane.xlu1 %1604 }
 0xb4a   :  { %v1609_v29 = vmul.f32 0.03125, %v1605_v27  ;;  %v3882_v27 = vld [vmem:[%s4784_s20] ss:$0 sm:$0xff] }
 0xb4b   :  { %v1608_v30 = vpop.xlane.xlu0 %1607 }
 0xb4c   :  { %v1611_v61 = vadd.f32 1e-12, %v1609_v29  ;;  %v1610_v33 = vmul.f32 0.03125, %v1608_v30 }
 0xb4e   :  { %3832 = vrsqrt.f32 %v1611_v61  ;;  %v1612_v34 = vadd.f32 1e-12, %v1610_v33 }
 0xb50   :  { %3834 = vrsqrt.f32 %v1612_v34 }
 0xb58   :  { %v3833_v35 = vpop.eup %3832 }
 0xb59   :  { %v1615_v50 = vmul.f32 %v3833_v35, %v1599_v32 }
 0xb5a   :  { %v3835_v42 = vpop.eup %3834 }
 0xb5b   :  { %v1623_v21 = vmul.f32 %v3250_v51, %v1615_v50  ;;  %v1616_v36 = vmul.f32 %v3835_v42, %v1600_v19  ;;  %v3883_v50 = vld [vmem:[%s4784_s20 + $0x1] ss:$0 sm:$0xff] }
 0xb5d   :  { %v1624_v37 = vmul.f32 %v3250_v51, %v1616_v36  ;;  %v4390_v38 = vadd.f32 %v3251_v28, %v1623_v21 }
 0xb5f   :  { %v4392_v39 = vadd.f32 %v3251_v28, %v1624_v37 }
 0xb61   :  { %v1638_v40 = vpack.c.bf16 %v4392_v39, %v4390_v38 }
 0xb63   :  { %3581 = vmatmul.mubr.msk.bf16.vlgmr.msra.gmra.mrb[44].mxu1 %vm65_vm0, %v1638_v40 }
 0xb64   :  { %3586 = vmatprep.mubr.msk.bf16.mxu1 %vm3915_vm1, %v3914_v15 }
 0xc36   :  { %v1696_v43 = vpop.f32.mrb[44].mxu1 }
 0xc37   :  { %v3582_v44 = vpop.f32.mrb[45].mxu1  ;;  %v1697_v48 = vadd.f32 %v3257_v41, %v1696_v43 }
 0xc38   :  { %v1699_v47 = vpop.f32.mrb[46].mxu1 }
 0xc39   :  { %v1700_v56 = vadd.f32 %v3257_v41, %v1699_v47  ;;  %v3583_v45 = vpop.f32.mrb[47].mxu1  ;;  %v4405_v52 = vpack.c.bf16 %v1697_v48, %v1697_v48 }
 0xc3a   :  { %v3884_v45 = vld [vmem:[%s4784_s20 + $0x2] ss:$0 sm:$0xff] }
 0xc3b   :  { %v3760_v49 = vpack.i.bf16 %v1700_v56, %v1697_v48  ;;  %v4409_v46 = vpack.c.bf16 %v1700_v56, %v1700_v56 }
 0xc3d   :  { %3761 = vrot.lane.b32.xlu0 %v3760_v49, %s3916_s3  ;;  %3756 = vrot.lane.b32.xlu1 %v3760_v49, %s3917_s28 }
 0xc41   :  { %3766 = vrot.lane.b32.xlu1 %v3760_v49, %s3918_s29 }
 0xc45   :  { %1732 = vrot.lane.b32.xlu1 %v4405_v52, %s3919_s30 }
 0xc49   :  { %1781 = vrot.lane.b32.xlu1 %v4409_v46, %s3919_s30 }
 0xcaf   :  { %v3762_v53 = vpop.permute.xlu0 %3761  ;;  %v3757_v54 = vpop.permute.xlu1 %3756 }
 0xcb0   :  { %v3759_v57 = vunpack.i.h.bf16 %v3757_v54  ;;  %v3758_v58 = vunpack.i.l.bf16 %v3757_v54  ;;  %v3764_v59 = vunpack.i.h.bf16 %v3762_v53  ;;  %v3763_v60 = vunpack.i.l.bf16 %v3762_v53  ;;  %v3885_v53 = vld [vmem:[%s4784_s20 + $0x3] ss:$0 sm:$0xff] }
 0xcb2   :  { %v4413_v63 = vpack.c.bf16 %v3759_v57, %v3759_v57  ;;  %v4415_v0 = vpack.c.bf16 %v3758_v58, %v3758_v58  ;;  %v4421_v2 = vpack.c.bf16 %v3764_v59, %v3764_v59  ;;  %v4423_v3 = vpack.c.bf16 %v3763_v60, %v3763_v60 }
 0xcb3   :  { %v3767_v1 = vpop.permute.xlu1 %3766 }
 0xcb4   :  { %1830 = vrot.lane.b32.xlu0 %v4415_v0, %s3919_s30  ;;  %1879 = vrot.lane.b32.xlu1 %v4413_v63, %s3919_s30  ;;  %v3769_v5 = vunpack.i.h.bf16 %v3767_v1  ;;  %v3768_v6 = vunpack.i.l.bf16 %v3767_v1 }
 0xcb6   :  { %v4430_v55 = vpack.c.bf16 %v3769_v5, %v3769_v5  ;;  %v4432_v9 = vpack.c.bf16 %v3768_v6, %v3768_v6 }
 0xcb7   :  { %v1733_v7 = vpop.permute.xlu1 %1732 }
 0xcb8   :  { %v1738_v8 = vsel %vm216_vm2, %v1733_v7, 0  ;;  %1928 = vrot.lane.b32.xlu0 %v4423_v3, %s3919_s30  ;;  %1977 = vrot.lane.b32.xlu1 %v4421_v2, %s3919_s30 }
 0xcb9   :  { %3585 = vmatpush3.bf16.xpose.msra.mxu1 %v1738_v8 }
 0xcba   :  { %3596 = vmatprep.subr.bf16.mxu1 %v3914_v15 }
 0xcbb   :  { %v1782_v62 = vpop.permute.xlu1 %1781 }
 0xcbc   :  { %v1787_v4 = vsel %vm216_vm2, %v1782_v62, 0  ;;  %2026 = vrot.lane.b32.xlu0 %v4432_v9, %s3919_s30  ;;  %2075 = vrot.lane.b32.xlu1 %v4430_v55, %s3919_s30 }
 0xcbd   :  { %3591 = vmatpush3.bf16.xpose.msra.mxu0 %v1787_v4 }
 0xcbe   :  { %3602 = vmatprep.subr.bf16.mxu0 %v3914_v15 }
 0xcc0   :  { %3587 = vmatmul.mubr.msk.bf16.vlgmr.msra.gmra.mrb[48].mxu1 %vm216_vm2, %v4405_v52 }
 0xcc1   :  { %3598 = vmatprep.mubr.msk.bf16.mxu1 %vm3915_vm1, %v3914_v15 }
 0xcc4   :  { %3593 = vmatmul.mubr.msk.bf16.vlgmr.msra.gmra.mrb[48].mxu0 %vm216_vm2, %v4409_v46 }
 0xcc5   :  { %3604 = vmatprep.mubr.msk.bf16.mxu0 %vm3915_vm1, %v3914_v15 }
 0xd26   :  { %v1831_v10 = vpop.permute.xlu0 %1830  ;;  %v1880_v11 = vpop.permute.xlu1 %1879 }
 0xd27   :  { %v1836_v12 = vsel %vm216_vm2, %v1831_v10, 0  ;;  %v1885_v13 = vsel %vm216_vm2, %v1880_v11, 0  ;;  %v3886_v11 = vld [vmem:[%s4784_s20 + $0x4] ss:$0 sm:$0xff] }
 0xd28   :  { %3597 = vmatpush3.bf16.xpose.msra.mxu1 %v1836_v12  ;;  %3603 = vmatpush3.bf16.xpose.msra.mxu0 %v1885_v13  ;;  %v3887_v13 = vld [vmem:[%s4784_s20 + $0x5] ss:$0 sm:$0xff] }
 0xd29   :  { %3608 = vmatprep.subr.bf16.mxu1 %v3914_v15  ;;  %3614 = vmatprep.subr.bf16.mxu0 %v3914_v15 }
 0xd2a   :  { %v1929_v14 = vpop.permute.xlu0 %1928  ;;  %v1978_v16 = vpop.permute.xlu1 %1977 }
 0xd2b   :  { %v1934_v17 = vsel %vm216_vm2, %v1929_v14, 0  ;;  %v1983_v31 = vsel %vm216_vm2, %v1978_v16, 0 }
 0xd2e   :  { %v2027_v32 = vpop.permute.xlu0 %2026  ;;  %v2076_v18 = vpop.permute.xlu1 %2075 }
 0xd2f   :  { %3599 = vmatmul.mubr.msk.bf16.vlgmr.msra.gmra.mrb[52].mxu1 %vm216_vm2, %v4415_v0  ;;  %3605 = vmatmul.mubr.msk.bf16.vlgmr.msra.gmra.mrb[52].mxu0 %vm216_vm2, %v4413_v63  ;;  %v2032_v19 = vsel %vm216_vm2, %v2027_v32, 0  ;;  %v2081_v20 = vsel %vm216_vm2, %v2076_v18, 0 }
 0xd30   :  { %3609 = vmatpush3.bf16.xpose.msra.mxu1 %v1934_v17  ;;  %3615 = vmatpush3.bf16.xpose.msra.mxu0 %v1983_v31 }
 0xd31   :  { %3610 = vmatprep.mubr.msk.bf16.mxu1 %vm3915_vm1, %v3914_v15  ;;  %3616 = vmatprep.mubr.msk.bf16.mxu0 %vm3915_vm1, %v3914_v15 }
 0xd32   :  { %3620 = vmatprep.subr.bf16.mxu1 %v3914_v15  ;;  %3626 = vmatprep.subr.bf16.mxu0 %v3914_v15 }
 0xd37   :  { %3611 = vmatmul.mubr.msk.bf16.vlgmr.msra.gmra.mrb[56].mxu1 %vm216_vm2, %v4423_v3  ;;  %3617 = vmatmul.mubr.msk.bf16.vlgmr.msra.gmra.mrb[56].mxu0 %vm216_vm2, %v4421_v2 }
 0xd38   :  { %3621 = vmatpush3.bf16.xpose.msra.mxu1 %v2032_v19  ;;  %3627 = vmatpush3.bf16.xpose.msra.mxu0 %v2081_v20 }
 0xd39   :  { %3622 = vmatprep.mubr.msk.bf16.mxu1 %vm3915_vm1, %v3914_v15  ;;  %3628 = vmatprep.mubr.msk.bf16.mxu0 %vm3915_vm1, %v3914_v15 }
 0xd3a   :  { %3638 = vmatprep.subr.bf16.mxu0 %v3914_v15  ;;  %3632 = vmatprep.subr.bf16.mxu1 %v3914_v15 }
 0xd3f   :  { %3623 = vmatmul.mubr.msk.bf16.vlgmr.msra.gmra.mrb[60].mxu1 %vm216_vm2, %v4432_v9  ;;  %3629 = vmatmul.mubr.msk.bf16.vlgmr.msra.gmra.mrb[60].mxu0 %vm216_vm2, %v4430_v55 }
 0xd40   :  { %3634 = vmatprep.mubr.msk.bf16.mxu1 %vm3915_vm1, %v3914_v15  ;;  %3640 = vmatprep.mubr.msk.bf16.mxu0 %vm3915_vm1, %v3914_v15 }
 0xd93   :  { %v1774_v22 = vpop.f32.mrb[48].mxu1 }
 0xd94   :  { %v2123_v23 = vmul.f32 0.35355338, %v1774_v22  ;;  %v3588_v24 = vpop.f32.mrb[49].mxu1 }
 0xd95   :  { %v1777_v25 = vpop.f32.mrb[50].mxu1 }
 0xd96   :  { %v3589_v26 = vpop.f32.mrb[51].mxu1  ;;  %v4488_v29 = vadd.f32 %v3882_v27, %v2123_v23 }
 0xd97   :  { %v1823_v30 = vpop.f32.mrb[48].mxu0  ;;  %v3888_v26 = vld [vmem:[%s4784_s20 + $0x6] ss:$0 sm:$0xff] }
 0xd98   :  { %v2124_v61 = vmul.f32 0.35355338, %v1823_v30  ;;  %v3594_v33 = vpop.f32.mrb[49].mxu0  ;;  %v2139_v34 = vsel %vm216_vm2, %v4488_v29, -inf }
 0xd99   :  { %2140 = vmax.xlane.f32.xlu0 %v2139_v34  ;;  %v1826_v35 = vpop.f32.mrb[50].mxu0 }
 0xd9a   :  { %v3595_v51 = vpop.f32.mrb[51].mxu0  ;;  %v4495_v42 = vadd.f32 %v3883_v50, %v2124_v61 }
 0xd9b   :  { %v3889_v51 = vld [vmem:[%s4784_s20 + $0x7] ss:$0 sm:$0xff] }
 0xd9c   :  { %v2142_v21 = vsel %vm216_vm2, %v4495_v42, -inf }
 0xd9d   :  { %2143 = vmax.xlane.f32.xlu1 %v2142_v21 }
 0xe02   :  { %v1872_v36 = vpop.f32.mrb[52].mxu1  ;;  %v1921_v28 = vpop.f32.mrb[52].mxu0 }
 0xe03   :  { %v2125_v37 = vmul.f32 0.35355338, %v1872_v36  ;;  %v2126_v40 = vmul.f32 0.35355338, %v1921_v28  ;;  %v3600_v41 = vpop.f32.mrb[53].mxu1  ;;  %v3606_v43 = vpop.f32.mrb[53].mxu0 }
 0xe04   :  { %v1875_v44 = vpop.f32.mrb[54].mxu1  ;;  %v1924_v47 = vpop.f32.mrb[54].mxu0 }
 0xe05   :  { %v3601_v48 = vpop.f32.mrb[55].mxu1  ;;  %v3607_v56 = vpop.f32.mrb[55].mxu0  ;;  %v4502_v49 = vadd.f32 %v3884_v45, %v2125_v37  ;;  %v4507_v54 = vadd.f32 %v3885_v53, %v2126_v40 }
 0xe07   :  { %v2145_v57 = vsel %vm216_vm2, %v4502_v49, -inf  ;;  %v2148_v60 = vsel %vm216_vm2, %v4507_v54, -inf }
 0xe08   :  { %2146 = vmax.xlane.f32.xlu0 %v2145_v57 }
 0xe0a   :  { %v1970_v58 = vpop.f32.mrb[56].mxu1  ;;  %v2019_v59 = vpop.f32.mrb[56].mxu0 }
 0xe0b   :  { %v2127_v1 = vmul.f32 0.35355338, %v1970_v58  ;;  %v2128_v5 = vmul.f32 0.35355338, %v2019_v59  ;;  %v3612_v6 = vpop.f32.mrb[57].mxu1  ;;  %v3618_v7 = vpop.f32.mrb[57].mxu0 }
 0xe0c   :  { %v1973_v8 = vpop.f32.mrb[58].mxu1  ;;  %2149 = vmax.xlane.f32.xlu0 %v2148_v60  ;;  %v2022_v62 = vpop.f32.mrb[58].mxu0 }
 0xe0d   :  { %v3613_v4 = vpop.f32.mrb[59].mxu1  ;;  %v3619_v10 = vpop.f32.mrb[59].mxu0  ;;  %v4516_v12 = vadd.f32 %v3886_v11, %v2127_v1  ;;  %v2136_v14 = vadd.f32 %v3887_v13, %v2128_v5 }
 0xe0f   :  { %v2151_v16 = vsel %vm216_vm2, %v4516_v12, -inf  ;;  %v2154_v17 = vsel %vm216_vm2, %v2136_v14, -inf }
 0xe10   :  { %2152 = vmax.xlane.f32.xlu0 %v2151_v16  ;;  %2155 = vmax.xlane.f32.xlu1 %v2154_v17 }
 0xe12   :  { %v2068_v31 = vpop.f32.mrb[60].mxu1  ;;  %v2117_v32 = vpop.f32.mrb[60].mxu0 }
 0xe13   :  { %v2129_v18 = vmul.f32 0.35355338, %v2068_v31  ;;  %v3624_v19 = vpop.f32.mrb[61].mxu1  ;;  %v3630_v20 = vpop.f32.mrb[61].mxu0  ;;  %v2130_v35 = vmul.f32 0.35355338, %v2117_v32 }
 0xe14   :  { %v2071_v22 = vpop.f32.mrb[62].mxu1  ;;  %v2120_v23 = vpop.f32.mrb[62].mxu0 }
 0xe15   :  { %v3625_v24 = vpop.f32.mrb[63].mxu1  ;;  %v3631_v25 = vpop.f32.mrb[63].mxu0  ;;  %v4527_v27 = vadd.f32 %v3888_v26, %v2129_v18  ;;  %v2138_v50 = vadd.f32 %v3889_v51, %v2130_v35 }
 0xe17   :  { %v2157_v30 = vsel %vm216_vm2, %v4527_v27, -inf  ;;  %v2160_v21 = vsel %vm216_vm2, %v2138_v50, -inf }
 0xe18   :  { %2158 = vmax.xlane.f32.xlu0 %v2157_v30 }
 0xe21   :  { %2283 = vrot.lane.b32.xlu1 %v4409_v46, %s3920_s0 }
 0xe25   :  { %2331 = vrot.lane.b32.xlu1 %v4415_v0, %s3920_s0 }
 0xe26   :  { %v2141_v61 = vpop.xlane.xlu0 %2140 }
 0xe27   :  { %v2163_v33 = vsub.f32 %v4488_v29, %v2141_v61 }
 0xe29   :  { %v2171_v34 = vmul.f32 1.442695, %v2163_v33 }
 0xe2b   :  { %3836 = vpow2.f32 %v2171_v34 }
 0xe2e   :  { %2235 = vrot.lane.b32.xlu0 %v4405_v52, %s3920_s0  ;;  %v2144_v52 = vpop.xlane.xlu1 %2143 }
 0xe2f   :  { %v2164_v29 = vsub.f32 %v4495_v42, %v2144_v52 }
 0xe31   :  { %v2173_v36 = vmul.f32 1.442695, %v2164_v29 }
 0xe33   :  { %3838 = vpow2.f32 %v2173_v36 }
 0xe35   :  { %v4542_v46 = vpop.eup %3836 }
 0xe36   :  { %v2187_v0 = vsel %vm216_vm2, %v4542_v46, 0.0 }
 0xe3d   :  { %v4549_v28 = vpop.eup %3838 }
 0xe3e   :  { %v2190_v37 = vsel %vm216_vm2, %v4549_v28, 0.0 }
 0xe49   :  { %2161 = vmax.xlane.f32.xlu1 %v2160_v21 }
 0xe4d   :  { %2188 = vadd.xlane.f32.xlu0 %v2187_v0 }
 0xe5a   :  { %2379 = vrot.lane.b32.xlu1 %v4413_v63, %s3920_s0 }
 0xe7e   :  { %2191 = vadd.xlane.f32.xlu1 %v2190_v37 }
 0xe8f   :  { %2475 = vrot.lane.b32.xlu1 %v4421_v2, %s3920_s0 }
 0xe95   :  { %v2147_v40 = vpop.xlane.xlu0 %2146 }
 0xe96   :  { %v2165_v41 = vsub.f32 %v4502_v49, %v2147_v40 }
 0xe98   :  { %v2175_v43 = vmul.f32 1.442695, %v2165_v41 }
 0xe99   :  { %v2150_v63 = vpop.xlane.xlu0 %2149 }
 0xe9a   :  { %3840 = vpow2.f32 %v2175_v43  ;;  %v2166_v44 = vsub.f32 %v4507_v54, %v2150_v63 }
 0xe9c   :  { %v2177_v47 = vmul.f32 1.442695, %v2166_v44 }
 0xe9d   :  { %v2156_v42 = vpop.xlane.xlu1 %2155  ;;  %v2153_v48 = vpop.xlane.xlu0 %2152 }
 0xe9e   :  { %v2168_v56 = vsub.f32 %v2136_v14, %v2156_v42  ;;  %3842 = vpow2.f32 %v2177_v47  ;;  %v2167_v7 = vsub.f32 %v4516_v12, %v2153_v48 }
 0xea0   :  { %v2181_v2 = vmul.f32 1.442695, %v2168_v56  ;;  %v2179_v8 = vmul.f32 1.442695, %v2167_v7 }
 0xea1   :  { %v2284_v45 = vpop.permute.xlu1 %2283 }
 0xea2   :  { %v2289_v53 = vsel %vm771_vm3, %v2284_v45, 0  ;;  %3844 = vpow2.f32 %v2181_v2 }
 0xea3   :  { %3639 = vmatpush3.bf16.msra.mxu0 %v2289_v53  ;;  %3846 = vpow2.f32 %v2179_v8 }
 0xea4   :  { %v4558_v57 = vpop.eup %3840  ;;  %3650 = vmatprep.subr.bf16.mxu0 %v3914_v15 }
 0xea5   :  { %v2159_v49 = vpop.xlane.xlu0 %2158  ;;  %v2193_v58 = vsel %vm216_vm2, %v4558_v57, 0.0  ;;  %v2332_v10 = vpop.permute.xlu1 %2331 }
 0xea6   :  { %2194 = vadd.xlane.f32.xlu0 %v2193_v58  ;;  %v2169_v62 = vsub.f32 %v4527_v27, %v2159_v49  ;;  %v2337_v23 = vsel %vm771_vm3, %v2332_v10, 0  ;;  %v3277_v49 = vld [vmem:[%s4764_s6 + $0x10] sm:$0xf]  ;;  %v3279_v10 = vld [vmem:[%s4764_s6 + $0x18] sm:$0xf] }
 0xea8   :  { %v4565_v60 = vpop.eup %3842  ;;  %v2183_v4 = vmul.f32 1.442695, %v2169_v62 }
 0xea9   :  { %v2236_v54 = vpop.permute.xlu0 %2235  ;;  %v2196_v1 = vsel %vm216_vm2, %v4565_v60, 0.0 }
 0xeaa   :  { %v2241_v59 = vsel %vm771_vm3, %v2236_v54, 0  ;;  %3848 = vpow2.f32 %v2183_v4  ;;  %v2632_v54 = vsel %vm771_vm3, %v3277_v49, 0 }
 0xeab   :  { %3633 = vmatpush3.bf16.msra.mxu1 %v2241_v59 }
 0xeac   :  { %3644 = vmatprep.subr.bf16.mxu1 %v3914_v15  ;;  %v4569_v5 = vpop.eup %3844 }
 0xead   :  { %v2202_v6 = vsel %vm216_vm2, %v4569_v5, 0.0  ;;  %v4577_v13 = vpop.eup %3846 }
 0xeae   :  { %v2199_v31 = vsel %vm216_vm2, %v4577_v13, 0.0 }
 0xeb3   :  { %2197 = vadd.xlane.f32.xlu1 %v2196_v1 }
 0xeb4   :  { %v4581_v32 = vpop.eup %3848 }
 0xeb7   :  { %2203 = vadd.xlane.f32.xlu1 %v2202_v6 }
 0xebc   :  { %2427 = vrot.lane.b32.xlu0 %v4423_v3, %s3920_s0  ;;  %v2205_v3 = vsel %vm216_vm2, %v4581_v32, 0.0 }
 0xed6   :  { %v2162_v11 = vpop.xlane.xlu1 %2161 }
 0xed7   :  { %v2170_v14 = vsub.f32 %v2138_v50, %v2162_v11 }
 0xed9   :  { %v2185_v16 = vmul.f32 1.442695, %v2170_v14 }
 0xeda   :  { %v2189_v17 = vpop.xlane.xlu0 %2188  ;;  %v2380_v24 = vpop.permute.xlu1 %2379 }
 0xedb   :  { %3850 = vpow2.f32 %v2185_v16  ;;  %2200 = vadd.xlane.f32.xlu0 %v2199_v31  ;;  %v2385_v61 = vsel %vm771_vm3, %v2380_v24, 0  ;;  %v2726_v16 = vsel %vm771_vm3, %v3279_v10, 0 }
 0xedc   :  { %3852 = vrcp.f32 %v2189_v17 }
 0xedf   :  { %2206 = vadd.xlane.f32.xlu0 %v2205_v3 }
 0xee5   :  { %v4585_v12 = vpop.eup %3850 }
 0xee6   :  { %v3853_v18 = vpop.eup %3852  ;;  %v2208_v19 = vsel %vm216_vm2, %v4585_v12, 0.0 }
 0xee7   :  { %v2219_v20 = vmul.f32 %v3853_v18, %v4542_v46  ;;  %2209 = vadd.xlane.f32.xlu1 %v2208_v19  ;;  %v3280_v19 = vld [vmem:[%s4764_s6 + $0x1c] sm:$0xf] }
 0xee8   :  { %v2773_v24 = vsel %vm771_vm3, %v3280_v19, 0 }
 0xee9   :  { %v2227_v22 = vpack.c.bf16 %v2219_v20, %v2219_v20 }
 0xeeb   :  { %3635 = vmatmul.mubr.msk.bf16.vlgmr.msra.gmra.mrb[64].mxu1 %vm216_vm2, %v2227_v22 }
 0xeec   :  { %3645 = vmatpush3.bf16.msra.mxu1 %v2337_v23  ;;  %3646 = vmatprep.mubr.msk.bf16.mxu1 %vm3915_vm1, %v3914_v15 }
 0xeed   :  { %3656 = vmatprep.subr.bf16.mxu1 %v3914_v15 }
 0xef5   :  { %2523 = vrot.lane.b32.xlu0 %v4432_v9, %s3920_s0 }
 0xef8   :  { %2571 = vrot.lane.b32.xlu1 %v4430_v55, %s3920_s0 }
 0xf0b   :  { %v2192_v25 = vpop.xlane.xlu1 %2191 }
 0xf0c   :  { %3854 = vrcp.f32 %v2192_v25 }
 0xf0f   :  { %v2476_v55 = vpop.permute.xlu1 %2475 }
 0xf16   :  { %v3855_v26 = vpop.eup %3854 }
 0xf17   :  { %v2220_v27 = vmul.f32 %v3855_v26, %v4549_v28  ;;  %v2481_v28 = vsel %vm771_vm3, %v2476_v55, 0 }
 0xf19   :  { %v2228_v30 = vpack.c.bf16 %v2220_v27, %v2220_v27 }
 0xf1b   :  { %3641 = vmatmul.mubr.msk.bf16.vlgmr.msra.gmra.mrb[64].mxu0 %vm216_vm2, %v2228_v30 }
 0xf1c   :  { %3651 = vmatpush3.bf16.msra.mxu0 %v2385_v61  ;;  %3652 = vmatprep.mubr.msk.bf16.mxu0 %vm3915_vm1, %v3914_v15 }
 0xf1d   :  { %3662 = vmatprep.subr.bf16.mxu0 %v3914_v15 }
 0xf33   :  { %v2195_v9 = vpop.xlane.xlu0 %2194 }
 0xf34   :  { %3856 = vrcp.f32 %v2195_v9 }
 0xf37   :  { %v2428_v35 = vpop.permute.xlu0 %2427 }
 0xf38   :  { %v2433_v21 = vsel %vm771_vm3, %v2428_v35, 0 }
 0xf3e   :  { %v3857_v33 = vpop.eup %3856 }
 0xf3f   :  { %v2221_v34 = vmul.f32 %v3857_v33, %v4558_v57 }
 0xf40   :  { %v2198_v51 = vpop.xlane.xlu1 %2197 }
 0xf41   :  { %3858 = vrcp.f32 %v2198_v51  ;;  %v2229_v50 = vpack.c.bf16 %v2221_v34, %v2221_v34 }
 0xf43   :  { %3647 = vmatmul.mubr.msk.bf16.vlgmr.msra.gmra.mrb[68].mxu1 %vm216_vm2, %v2229_v50 }
 0xf44   :  { %3657 = vmatpush3.bf16.msra.mxu1 %v2433_v21  ;;  %v2204_v46 = vpop.xlane.xlu1 %2203  ;;  %3658 = vmatprep.mubr.msk.bf16.mxu1 %vm3915_vm1, %v3914_v15 }
 0xf45   :  { %3860 = vrcp.f32 %v2204_v46  ;;  %3668 = vmatprep.subr.bf16.mxu1 %v3914_v15 }
 0xf4b   :  { %v3859_v0 = vpop.eup %3858 }
 0xf4c   :  { %v2222_v52 = vmul.f32 %v3859_v0, %v4565_v60 }
 0xf4e   :  { %v2230_v29 = vpack.c.bf16 %v2222_v52, %v2222_v52 }
 0xf4f   :  { %v3861_v36 = vpop.eup %3860 }
 0xf50   :  { %3653 = vmatmul.mubr.msk.bf16.vlgmr.msra.gmra.mrb[68].mxu0 %vm216_vm2, %v2230_v29  ;;  %v2224_v37 = vmul.f32 %v3861_v36, %v4569_v5  ;;  %v3278_v5 = vld [vmem:[%s4764_s6 + $0x14] sm:$0xf] }
 0xf51   :  { %3663 = vmatpush3.bf16.msra.mxu0 %v2481_v28  ;;  %3664 = vmatprep.mubr.msk.bf16.mxu0 %vm3915_vm1, %v3914_v15  ;;  %v2679_v6 = vsel %vm771_vm3, %v3278_v5, 0 }
 0xf52   :  { %3674 = vmatprep.subr.bf16.mxu0 %v3914_v15  ;;  %v2232_v40 = vpack.c.bf16 %v2224_v37, %v2224_v37 }
 0xf58   :  { %3665 = vmatmul.mubr.msk.bf16.vlgmr.msra.gmra.mrb[72].mxu0 %vm216_vm2, %v2232_v40 }
 0xf59   :  { %3676 = vmatprep.mubr.msk.bf16.mxu0 %vm3915_vm1, %v3914_v15 }
 0xf68   :  { %v2201_v41 = vpop.xlane.xlu0 %2200 }
 0xf69   :  { %3862 = vrcp.f32 %v2201_v41 }
 0xf6c   :  { %v2207_v43 = vpop.xlane.xlu0 %2206 }
 0xf6d   :  { %3864 = vrcp.f32 %v2207_v43 }
 0xf70   :  { %v2524_v47 = vpop.permute.xlu0 %2523 }
 0xf71   :  { %v2529_v45 = vsel %vm771_vm3, %v2524_v47, 0 }
 0xf73   :  { %v3863_v63 = vpop.eup %3862 }
 0xf74   :  { %v2223_v44 = vmul.f32 %v3863_v63, %v4577_v13  ;;  %v2210_v42 = vpop.xlane.xlu1 %2209 }
 0xf75   :  { %3866 = vrcp.f32 %v2210_v42 }
 0xf76   :  { %v2231_v48 = vpack.c.bf16 %v2223_v44, %v2223_v44 }
 0xf77   :  { %v3865_v56 = vpop.eup %3864 }
 0xf78   :  { %3659 = vmatmul.mubr.msk.bf16.vlgmr.msra.gmra.mrb[72].mxu1 %vm216_vm2, %v2231_v48  ;;  %v2572_v53 = vpop.permute.xlu1 %2571  ;;  %v2225_v2 = vmul.f32 %v3865_v56, %v4581_v32 }
 0xf79   :  { %3669 = vmatpush3.bf16.msra.mxu1 %v2529_v45  ;;  %v2577_v57 = vsel %vm771_vm3, %v2572_v53, 0  ;;  %3670 = vmatprep.mubr.msk.bf16.mxu1 %vm3915_vm1, %v3914_v15 }
 0xf7a   :  { %3675 = vmatpush3.bf16.msra.mxu0 %v2577_v57  ;;  %3680 = vmatprep.subr.bf16.mxu1 %v3914_v15  ;;  %v2233_v58 = vpack.c.bf16 %v2225_v2, %v2225_v2 }
 0xf7b   :  { %3686 = vmatprep.subr.bf16.mxu0 %v3914_v15 }
 0xf7f   :  { %v3867_v59 = vpop.eup %3866 }
 0xf80   :  { %v2226_v60 = vmul.f32 %v3867_v59, %v4585_v12  ;;  %3671 = vmatmul.mubr.msk.bf16.vlgmr.msra.gmra.mrb[76].mxu1 %vm216_vm2, %v2233_v58 }
 0xf81   :  { %3681 = vmatpush3.bf16.msra.mxu1 %v2632_v54  ;;  %3682 = vmatprep.mubr.msk.bf16.mxu1 %vm3915_vm1, %v3914_v15 }
 0xf82   :  { %v2234_v1 = vpack.c.bf16 %v2226_v60, %v2226_v60  ;;  %3692 = vmatprep.subr.bf16.mxu1 %v3914_v15 }
 0xf84   :  { %3677 = vmatmul.mubr.msk.bf16.vlgmr.msra.gmra.mrb[76].mxu0 %vm216_vm2, %v2234_v1 }
 0xf85   :  { %3688 = vmatprep.mubr.msk.bf16.mxu0 %vm3915_vm1, %v3914_v15  ;;  %3687 = vmatpush3.bf16.msra.mxu0 %v2679_v6 }
 0xf86   :  { %3698 = vmatprep.subr.bf16.mxu0 %v3914_v15 }
 0xfbe   :  { %v2277_v7 = vpop.f32.mrb[64].mxu1 }
 0xfbf   :  { %v3636_v8 = vpop.f32.mrb[65].mxu1 }
 0xfc0   :  { %v2280_v62 = vpop.f32.mrb[66].mxu1 }
 0xfc1   :  { %v3637_v4 = vpop.f32.mrb[67].mxu1 }
 0xfc2   :  { %v3286_v4 = vld [vmem:[%s4765_s7 + $0x1] ss:$0 sm:$0xff] }
 0xfee   :  { %v2325_v11 = vpop.f32.mrb[64].mxu0 }
 0xfef   :  { %v2619_v13 = vpack.c.bf16 %v2325_v11, %v2277_v7  ;;  %v3642_v14 = vpop.f32.mrb[65].mxu0 }
 0xff0   :  { %v2328_v17 = vpop.f32.mrb[66].mxu0 }
 0xff1   :  { %v3643_v31 = vpop.f32.mrb[67].mxu0  ;;  %3683 = vmatmul.mubr.msk.bf16.vlgmr.msra.gmra.mrb[80].mxu1 %vm216_vm2, %v2619_v13 }
 0xff2   :  { %3693 = vmatpush3.bf16.msra.mxu1 %v2726_v16  ;;  %3694 = vmatprep.mubr.msk.bf16.mxu1 %vm3915_vm1, %v3914_v15 }
 0xff3   :  { %3704 = vmatprep.subr.bf16.mxu1 %v3914_v15 }
0x1016   :  { %v2373_v32 = vpop.f32.mrb[68].mxu1 }
0x1017   :  { %v3648_v3 = vpop.f32.mrb[69].mxu1 }
0x1018   :  { %v2376_v12 = vpop.f32.mrb[70].mxu1 }
0x1019   :  { %v3649_v18 = vpop.f32.mrb[71].mxu1 }
0x1023   :  { %v2421_v20 = vpop.f32.mrb[68].mxu0 }
0x1024   :  { %v2620_v22 = vpack.c.bf16 %v2421_v20, %v2373_v32  ;;  %v3654_v23 = vpop.f32.mrb[69].mxu0 }
0x1025   :  { %v2424_v25 = vpop.f32.mrb[70].mxu0 }
0x1026   :  { %v3655_v26 = vpop.f32.mrb[71].mxu0  ;;  %3689 = vmatmul.mubr.msk.bf16.vlgmr.msra.gmra.mrb[80].mxu0 %vm216_vm2, %v2620_v22 }
0x1027   :  { %3699 = vmatpush3.bf16.msra.mxu0 %v2773_v24  ;;  %3700 = vmatprep.mubr.msk.bf16.mxu0 %vm3915_vm1, %v3914_v15 }
0x1028   :  { %3712 = vmatprep.subr.bf16.mxu0 %v3914_v15 }
0x102b   :  { %v2517_v27 = vpop.f32.mrb[72].mxu0 }
0x102c   :  { %v3666_v30 = vpop.f32.mrb[73].mxu0 }
0x102d   :  { %v2520_v61 = vpop.f32.mrb[74].mxu0 }
0x102e   :  { %v3667_v9 = vpop.f32.mrb[75].mxu0 }
0x102f   :  { %v3781_v9 = vld [vmem:[%s4768_s10 + $0x18] sm:$0xff]  }
0x104b   :  { %v2469_v55 = vpop.f32.mrb[72].mxu1 }
0x104c   :  { %v2621_v33 = vpack.c.bf16 %v2517_v27, %v2469_v55  ;;  %v3660_v34 = vpop.f32.mrb[73].mxu1 }
0x104d   :  { %v2472_v35 = vpop.f32.mrb[74].mxu1 }
0x104e   :  { %v3661_v51 = vpop.f32.mrb[75].mxu1  ;;  %3695 = vmatmul.mubr.msk.bf16.vlgmr.msra.gmra.mrb[84].mxu1 %vm216_vm2, %v2621_v33 }
0x104f   :  { %3708 = vmatprep.mubr.msk.bf16.mxu1 %vm3915_vm1, %v3914_v15 }
0x1053   :  { %v2565_v50 = vpop.f32.mrb[76].mxu1 }
0x1054   :  { %v3672_v21 = vpop.f32.mrb[77].mxu1 }
0x1055   :  { %v2568_v46 = vpop.f32.mrb[78].mxu1 }
0x1056   :  { %v3673_v0 = vpop.f32.mrb[79].mxu1 }
0x1057   :  { %v2613_v52 = vpop.f32.mrb[76].mxu0  ;;  %v3289_v0 = vld [vmem:[%s4766_s8 + $0x1] ss:$0 sm:$0xff] }
0x1058   :  { %v2622_v29 = vpack.c.bf16 %v2613_v52, %v2565_v50  ;;  %v3678_v36 = vpop.f32.mrb[77].mxu0 }
0x1059   :  { %v2616_v28 = vpop.f32.mrb[78].mxu0 }
0x105a   :  { %v3679_v37 = vpop.f32.mrb[79].mxu0  ;;  %3701 = vmatmul.mubr.msk.bf16.vlgmr.msra.gmra.mrb[84].mxu0 %vm216_vm2, %v2622_v29  ;;  %v3290_v28 = vld [vmem:[%s4767_s9 + $0x1] ss:$0 sm:$0xff] }
0x105b   :  { %3720 = vmatprep.mubr.msk.bf16.mxu0 %vm3915_vm1, %v3914_v15 }
0x10c4   :  { %v2668_v40 = vpop.f32.mrb[80].mxu1 }
0x10c5   :  { %v3684_v41 = vpop.f32.mrb[81].mxu1  ;;  %v2816_v42 = vsel %vm65_vm0, %v2668_v40, 0.0 }
0x10c6   :  { %v2671_v43 = vpop.f32.mrb[82].mxu1 }
0x10c7   :  { %v3685_v63 = vpop.f32.mrb[83].mxu1  ;;  %v2823_v53 = vsel %vm65_vm0, %v2671_v43, 0.0 }
0x10c8   :  { %v3782_v63 = vld [vmem:[%s4770_s12 + $0x20] sm:$0xff]  }
0x10c9   :  { %3713 = vmatpush3.bf16.msra.mxu0 %v3782_v63 }
0x10ca   :  { %3714 = vmatprep.subr.bf16.mxu0 %v3914_v15 }
0x10f9   :  { %v2715_v44 = vpop.f32.mrb[80].mxu0 }
0x10fa   :  { %v2817_v47 = vsel %vm65_vm0, %v2715_v44, 0.0  ;;  %v3690_v48 = vpop.f32.mrb[81].mxu0  ;;  %v3783_v44 = vld [vmem:[%s4770_s12 + $0x28] sm:$0xff]  }
0x10fb   :  { %v2818_v56 = vadd.f32 %v2817_v47, %v2816_v42  ;;  %v2718_v45 = vpop.f32.mrb[82].mxu0  ;;  %3715 = vmatpush3.bf16.msra.mxu0 %v3783_v44  ;;  %v3784_v42 = vld [vmem:[%s4770_s12 + $0x30] sm:$0xff]   ;;  %v3785_v47 = vld [vmem:[%s4770_s12 + $0x38] sm:$0xff]   ;;  %v3296_v48 = vld [vmem:[%s4769_s11 + $0x1] ss:$0 sm:$0xff] }
0x10fc   :  { %v2824_v57 = vsel %vm65_vm0, %v2718_v45, 0.0  ;;  %v3691_v2 = vpop.f32.mrb[83].mxu0  ;;  %3716 = vmatprep.subr.bf16.mxu0 %v3914_v15 }
0x10fd   :  { %v2825_v49 = vadd.f32 %v2824_v57, %v2823_v53 }
0x10ff   :  { %3717 = vmatpush3.bf16.msra.mxu0 %v3784_v42 }
0x1100   :  { %3718 = vmatprep.subr.bf16.mxu0 %v3914_v15 }
0x1103   :  { %3719 = vmatpush3.bf16.msra.mxu0 %v3785_v47 }
0x1121   :  { %v2762_v58 = vpop.f32.mrb[84].mxu1 }
0x1122   :  { %v2819_v54 = vsel %vm65_vm0, %v2762_v58, 0.0  ;;  %v3696_v59 = vpop.f32.mrb[85].mxu1 }
0x1123   :  { %v2820_v60 = vadd.f32 %v2819_v54, %v2818_v56  ;;  %v2765_v1 = vpop.f32.mrb[86].mxu1 }
0x1124   :  { %v2826_v5 = vsel %vm65_vm0, %v2765_v1, 0.0  ;;  %v3697_v6 = vpop.f32.mrb[87].mxu1 }
0x1125   :  { %v2827_v7 = vadd.f32 %v2826_v5, %v2825_v49 }
0x112d   :  { %v2809_v8 = vpop.f32.mrb[84].mxu0 }
0x112e   :  { %v2821_v62 = vsel %vm65_vm0, %v2809_v8, 0.0  ;;  %v3702_v10 = vpop.f32.mrb[85].mxu0 }
0x112f   :  { %v2822_v11 = vadd.f32 %v2821_v62, %v2820_v60  ;;  %v2812_v13 = vpop.f32.mrb[86].mxu0 }
0x1130   :  { %v2828_v14 = vsel %vm65_vm0, %v2812_v13, 0.0  ;;  %v3703_v16 = vpop.f32.mrb[87].mxu0 }
0x1131   :  { %v2838_v17 = vadd.f32 %v3286_v4, %v2822_v11  ;;  %v2829_v31 = vadd.f32 %v2828_v14, %v2827_v7 }
0x1133   :  { %v2839_v32 = vadd.f32 %v3286_v4, %v2829_v31  ;;  %v2840_v3 = vadd.f32 %v2838_v17, %v4390_v38 }
0x1135   :  { %v2846_v12 = vsel %vm65_vm0, %v2840_v3, 0.0  ;;  %v2841_v18 = vadd.f32 %v2839_v32, %v4392_v39  ;;  %v3780_v39 = vld [vmem:[%s4768_s10 + $0x10] sm:$0xff]  }
0x1136   :  { %2847 = vadd.xlane.f32.xlu0 %v2846_v12  ;;  %3705 = vmatpush3.bf16.msra.mxu1 %v3780_v39 }
0x1137   :  { %v2849_v19 = vsel %vm65_vm0, %v2841_v18, 0.0  ;;  %3706 = vmatprep.subr.bf16.mxu1 %v3914_v15 }
0x1138   :  { %2850 = vadd.xlane.f32.xlu1 %v2849_v19 }
0x113a   :  { %3707 = vmatpush3.bf16.msra.mxu1 %v3781_v9 }
0x113b   :  { %3724 = vmatprep.subr.bf16.mxu1 %v3914_v15 }
0x11c3   :  { %v2848_v20 = vpop.xlane.xlu0 %2847 }
0x11c4   :  { %v2852_v22 = vmul.f32 0.03125, %v2848_v20 }
0x11c5   :  { %v2851_v23 = vpop.xlane.xlu1 %2850 }
0x11c6   :  { %v2854_v24 = vsub.f32 %v2840_v3, %v2852_v22  ;;  %v2853_v25 = vmul.f32 0.03125, %v2851_v23  ;;  %v3309_v3 = vld [vmem:[%s4771_s13 + $0x1] ss:$0 sm:$0xff] }
0x11c8   :  { %v2855_v26 = vsub.f32 %v2841_v18, %v2853_v25  ;;  %v2856_v27 = vmul.f32 %v2854_v24, %v2854_v24 }
0x11ca   :  { %v2858_v30 = vsel %vm65_vm0, %v2856_v27, 0.0  ;;  %v2857_v61 = vmul.f32 %v2855_v26, %v2855_v26 }
0x11cb   :  { %2859 = vadd.xlane.f32.xlu0 %v2858_v30 }
0x11cc   :  { %v2861_v38 = vsel %vm65_vm0, %v2857_v61, 0.0 }
0x11cf   :  { %2862 = vadd.xlane.f32.xlu0 %v2861_v38 }
0x1258   :  { %v2860_v55 = vpop.xlane.xlu0 %2859 }
0x1259   :  { %v2864_v33 = vmul.f32 0.03125, %v2860_v55 }
0x125b   :  { %v2866_v34 = vadd.f32 1e-12, %v2864_v33 }
0x125c   :  { %v2863_v35 = vpop.xlane.xlu0 %2862 }
0x125d   :  { %3868 = vrsqrt.f32 %v2866_v34  ;;  %v2865_v51 = vmul.f32 0.03125, %v2863_v35 }
0x125f   :  { %v2867_v50 = vadd.f32 1e-12, %v2865_v51 }
0x1261   :  { %3870 = vrsqrt.f32 %v2867_v50  ;;  %v3786_v50 = vld [vmem:[%s4774_s16] sm:$0xff]  }
0x1267   :  { %v3869_v21 = vpop.eup %3868 }
0x1268   :  { %v2870_v46 = vmul.f32 %v3869_v21, %v2854_v24  ;;  %v3787_v21 = vld [vmem:[%s4774_s16 + $0x8] sm:$0xff]  }
0x126a   :  { %v2878_v29 = vmul.f32 %v3289_v0, %v2870_v46 }
0x126b   :  { %v3871_v52 = vpop.eup %3870 }
0x126c   :  { %v2871_v36 = vmul.f32 %v3871_v52, %v2855_v26  ;;  %v2886_v40 = vadd.f32 %v3290_v28, %v2878_v29 }
0x126e   :  { %v2879_v37 = vmul.f32 %v3289_v0, %v2871_v36 }
0x1270   :  { %v2887_v41 = vadd.f32 %v3290_v28, %v2879_v37 }
0x1272   :  { %v2893_v43 = vpack.c.bf16 %v2887_v41, %v2886_v40 }
0x1274   :  { %3709 = vmatmul.mubr.msk.bf16.vlgmr.msra.gmra.mrb[88].mxu1 %vm65_vm0, %v2893_v43 }
0x1275   :  { %3728 = vmatprep.mubr.msk.bf16.mxu1 %vm3915_vm1, %v3914_v15  ;;  %3725 = vmatpush3.bf16.msra.mxu1 %v3786_v50 }
0x1276   :  { %3726 = vmatprep.subr.bf16.mxu1 %v3914_v15  ;;  %v3318_v15 = vld [vmem:[%s4773_s15 + $0x1] ss:$0 sm:$0xff]  ;;  %s3921_s15 = smov [#allocation2]  }
0x1277   :  { %s3195_s26 = sshll.u32 %s3921_s15, 4  ;;  %s3196_s26 = int_to_ptr.vmem [resolvable:$true] %s3195_s26 }
0x1278   :  { %s3890_s27 = scalar_lea.vmem %s3196_s26, 32  ;;  %p3895_p1 = scmp.lt.s32.totalorder %s3196_s26, %s3196_s26 }
0x1279   :  { %3727 = vmatpush3.bf16.msra.mxu1 %v3787_v21  ;;  %p3891_p0 = scmp.ne.s32.totalorder %s3196_s26, %s3890_s27  ;;  %p3896_p2 = scmp.lt.s32.totalorder %s3890_s27, %s3890_s27 }
0x127b   :  { %p3897_p3 = por %p3896_p2, %p3895_p1 }
0x127d   :  { %p3898_p4 = pnand %p3897_p3, %p3891_p0 }
0x1347   :  { %v2951_v56 = vpop.f32.mrb[88].mxu1 }
0x1348   :  { %v2952_v45 = vadd.f32 %v3296_v48, %v2951_v56  ;;  %v3710_v53 = vpop.f32.mrb[89].mxu1 }
0x1349   :  { %v2954_v57 = vpop.f32.mrb[90].mxu1 }
0x134a   :  { %v2960_v2 = vmul.f32 0.044715, %v2952_v45  ;;  %v2955_v49 = vadd.f32 %v3296_v48, %v2954_v57  ;;  %v3711_v58 = vpop.f32.mrb[91].mxu1  ;;  %v2958_v13 = vmul.f32 0.5, %v2952_v45 }
0x134c   :  { %v2962_v54 = vmul.f32 %v2960_v2, %v2952_v45  ;;  %v2961_v59 = vmul.f32 0.044715, %v2955_v49  ;;  %v2959_v14 = vmul.f32 0.5, %v2955_v49 }
0x134e   :  { %v2964_v60 = vmul.f32 %v2962_v54, %v2952_v45  ;;  %v2963_v1 = vmul.f32 %v2961_v59, %v2955_v49  ;;  %v3319_v54 = vld [vmem:[%s4775_s17] ss:$0 sm:$0xff] }
0x1350   :  { %v2966_v5 = vadd.f32 %v2964_v60, %v2952_v45  ;;  %v2965_v6 = vmul.f32 %v2963_v1, %v2955_v49 }
0x1352   :  { %v2968_v7 = vmul.f32 0.7978846, %v2966_v5  ;;  %v2967_v8 = vadd.f32 %v2965_v6, %v2955_v49 }
0x1354   :  { %3872 = vtanh.f32 %v2968_v7  ;;  %v2969_v62 = vmul.f32 0.7978846, %v2967_v8 }
0x1356   :  { %3874 = vtanh.f32 %v2969_v62 }
0x135e   :  { %v3873_v4 = vpop.eup %3872 }
0x135f   :  { %v2972_v10 = vadd.f32 1.0, %v3873_v4 }
0x1360   :  { %v3875_v11 = vpop.eup %3874 }
0x1361   :  { %v2973_v16 = vadd.f32 1.0, %v3875_v11  ;;  %v2974_v17 = vmul.f32 %v2972_v10, %v2958_v13 }
0x1363   :  { %v2975_v31 = vmul.f32 %v2973_v16, %v2959_v14 }
0x1365   :  { %v2985_v32 = vpack.c.bf16 %v2975_v31, %v2974_v17 }
0x1367   :  { %3721 = vmatmul.mubr.msk.bf16.vlgmr.msra.gmra.mrb[88].mxu0 %vm1542_vm4, %v2985_v32 }
0x143a   :  { %v3055_v12 = vpop.f32.mrb[88].mxu0 }
0x143b   :  { %v3056_v18 = vadd.f32 %v3309_v3, %v3055_v12  ;;  %v3722_v19 = vpop.f32.mrb[89].mxu0 }
0x143c   :  { %v3058_v20 = vpop.f32.mrb[90].mxu0 }
0x143d   :  { %v3059_v22 = vadd.f32 %v3309_v3, %v3058_v20  ;;  %v3723_v23 = vpop.f32.mrb[91].mxu0  ;;  %v3062_v24 = vadd.f32 %v3056_v18, %v2886_v40  ;;  %v3317_v40 = vld [vmem:[%s4772_s14 + $0x1] ss:$0 sm:$0xff] }
0x143f   :  { %v3068_v25 = vsel %vm65_vm0, %v3062_v24, 0.0  ;;  %v3063_v26 = vadd.f32 %v3059_v22, %v2887_v41 }
0x1440   :  { %3069 = vadd.xlane.f32.xlu1 %v3068_v25 }
0x1441   :  { %v3071_v27 = vsel %vm65_vm0, %v3063_v26, 0.0 }
0x1442   :  { %3072 = vadd.xlane.f32.xlu0 %v3071_v27 }
0x14cd   :  { %v3070_v30 = vpop.xlane.xlu1 %3069 }
0x14ce   :  { %v3074_v61 = vmul.f32 0.03125, %v3070_v30 }
0x14cf   :  { %v3073_v38 = vpop.xlane.xlu0 %3072 }
0x14d0   :  { %v3076_v39 = vsub.f32 %v3062_v24, %v3074_v61  ;;  %v3075_v9 = vmul.f32 0.03125, %v3073_v38 }
0x14d2   :  { %v3077_v55 = vsub.f32 %v3063_v26, %v3075_v9  ;;  %v3078_v33 = vmul.f32 %v3076_v39, %v3076_v39 }
0x14d4   :  { %v3080_v34 = vsel %vm65_vm0, %v3078_v33, 0.0  ;;  %v3079_v35 = vmul.f32 %v3077_v55, %v3077_v55 }
0x14d5   :  { %3081 = vadd.xlane.f32.xlu1 %v3080_v34 }
0x14d6   :  { %v3083_v51 = vsel %vm65_vm0, %v3079_v35, 0.0 }
0x14d7   :  { %3084 = vadd.xlane.f32.xlu0 %v3083_v51 }
0x1562   :  { %v3082_v46 = vpop.xlane.xlu1 %3081 }
0x1563   :  { %v3086_v0 = vmul.f32 0.03125, %v3082_v46 }
0x1564   :  { %v3085_v52 = vpop.xlane.xlu0 %3084 }
0x1565   :  { %v3088_v29 = vadd.f32 1e-12, %v3086_v0  ;;  %v3087_v36 = vmul.f32 0.03125, %v3085_v52 }
0x1567   :  { %3876 = vrsqrt.f32 %v3088_v29  ;;  %v3089_v28 = vadd.f32 1e-12, %v3087_v36 }
0x1569   :  { %3878 = vrsqrt.f32 %v3089_v28 }
0x1571   :  { %v3877_v37 = vpop.eup %3876 }
0x1572   :  { %v3092_v41 = vmul.f32 %v3877_v37, %v3076_v39 }
0x1573   :  { %v3879_v43 = vpop.eup %3878 }
0x1574   :  { %v3100_v63 = vmul.f32 %v3317_v40, %v3092_v41  ;;  %v3093_v44 = vmul.f32 %v3879_v43, %v3077_v55 }
0x1576   :  { %v3108_v42 = vadd.f32 %v3318_v15, %v3100_v63  ;;  %v3101_v47 = vmul.f32 %v3317_v40, %v3093_v44 }
0x1578   :  { %v3109_v48 = vadd.f32 %v3318_v15, %v3101_v47  ;;  %v3114_v56 = vpack.c.bf16 %v3108_v42, %v3108_v42 }
0x157a   :  { %v3115_v45 = vpack.c.bf16 %v3109_v48, %v3109_v48  ;;  %v3125_v57 = vunpack.c.l.b16 %v3114_v56 }
0x157c   :  { %v3126_v53 = vunpack.c.l.b16 %v3115_v45 }
0x157e   :  { %v3127_v2 = vrot.slane %v3126_v53, 7 }
0x1580   :  { %v3129_v49 = vsel %vm3128_vm5, %v3127_v2, %v3125_v57 }
0x1581   :  { %v3130_v58 = vpack.c.b16 %v3129_v49, %v3129_v49 }
0x1583   :  { %3729 = vmatmul.mubr.msk.bf16.vlgmr.msra.gmra.mrb[92].mxu1 %vm65_vm0, %v3130_v58 }
0x1656   :  { %v3180_v59 = vpop.f32.mrb[92].mxu1 }
0x1657   :  { %v3181_v60 = vadd.f32 %v3319_v54, %v3180_v59  ;;  %v3730_v1 = vpop.f32.mrb[93].mxu1 }
0x1658   :  { %v3183_v5 = vpop.f32.mrb[94].mxu1 }
0x1659   :  { %3880 = vtanh.f32 %v3181_v60  ;;  %v3731_v6 = vpop.f32.mrb[95].mxu1 }
0x1663   :  { %v3881_v7 = vpop.eup %3880 }
0x1664   :  { %3188 = vst.msk [vmem:[#allocation2] sm:$0x3] %vm3187_vm6, %v3881_v7 }
0x1665   :  { %3901 = shalt.err (!%p3898_p4)
}
0x1666   :  { %s3902_s1 = scalar_lea.hbm %s4776_s18, 32 }
0x1667   :  { %p3903_p5 = scmp.ne.s32.totalorder %s4776_s18, %s3902_s1  ;;  %p3906_p6 = scmp.lt.u32.totalorder %s3902_s1, %s4776_s18 }
0x1669   :  { %p3908_p7 = pnand %p3906_p6, %p3903_p5 }
0x166b   :  { %3911 = shalt.err (!%p3908_p7)
}
0x166c   :  { %3198 = dma.vmem_to_hbm [thread:$0]  %s3196_s26, 32, %s4776_s18, [#allocation3]  }
0x166d   :  { %3912 = dma.done.wait [#allocation3], 32  }
0x166e   :  { %3913 = vsyncadd [#allocation3], 4294967264 }
0x166f   :  { %3202 = vsyncpa [#allocation3], 1 }

</bundles_post_ra>
